<compile_context>
chip_gen: v5e
topology: v5e:2x2
jax: 0.10.0
libtpu: 0.0.40
codegen_flags: <defaults>
</compile_context>

<pallas_src>
import jax
import jax.numpy as jnp
from jax.experimental import pallas as pl
from jax.experimental.pallas import tpu as pltpu

N_EMBD = 198
HIDDEN = 4 * N_EMBD        # 792
DROPOUT_P = 0.2            # eval mode -> identity

LANE = 128
SUBLANE = 8

C_PAD = 256                # round_up(198, 128)
H_PAD = 896                # round_up(792, 128); do NOT pad to 1024 (wasted FLOPs)
TILE_M_DEFAULT = 1024      # ~8 MiB resident with bf16 operands; fits every gen


def _round_up(x, m):
    return ((x + m - 1) // m) * m


def feedforward_kernel(x_ref, w1_ref, b1_ref, w2_ref, b2_ref, o_ref):
    # x_ref : (TILE_M, C_PAD)  bf16  (streamed)
    # w1_ref: (C_PAD, H_PAD)   bf16  (resident)   b1_ref: (1, H_PAD) f32
    # w2_ref: (H_PAD, C_PAD)   bf16  (resident)   b2_ref: (1, C_PAD) f32
    # o_ref : (TILE_M, C_PAD)  f32
    x = x_ref[...]

    # Linear 1: bf16 MXU operands, f32 accumulation; bias + ReLU on f32 (VPU).
    h = jnp.dot(x, w1_ref[...], preferred_element_type=jnp.float32)
    h = jnp.maximum(h + b1_ref[...], 0.0)

    # Linear 2: cast activations back to bf16 for the MXU, accumulate f32.
    y = jnp.dot(h.astype(jnp.bfloat16), w2_ref[...],
                preferred_element_type=jnp.float32)
    y = y + b2_ref[...]

    # Dropout(p=0.2) in eval mode is the identity.
    o_ref[...] = y.astype(o_ref.dtype)


def pad_params(w1, b1, w2, b2):
    """One-time feature-dim zero-pad + bf16 cast of the static parameters
    (hoisted out of the per-call hot path). Zero rows/cols guarantee the first
    198 output columns are unaffected by padding."""
    w1p = jnp.zeros((C_PAD, H_PAD), jnp.bfloat16).at[:N_EMBD, :HIDDEN].set(
        w1.astype(jnp.bfloat16))
    b1p = jnp.zeros((1, H_PAD), jnp.float32).at[:, :HIDDEN].set(
        b1.reshape(1, HIDDEN).astype(jnp.float32))
    w2p = jnp.zeros((H_PAD, C_PAD), jnp.bfloat16).at[:HIDDEN, :N_EMBD].set(
        w2.astype(jnp.bfloat16))
    b2p = jnp.zeros((1, C_PAD), jnp.float32).at[:, :N_EMBD].set(
        b2.reshape(1, N_EMBD).astype(jnp.float32))
    return w1p, b1p, w2p, b2p


def feedforward(x, padded_params, *, tile_m=TILE_M_DEFAULT):
    """x: (B, T, 198) float32. padded_params: output of pad_params().
    Returns (B, T, 198) float32."""
    B, T, C = x.shape
    assert C == N_EMBD
    w1p, b1p, w2p, b2p = padded_params
    M = B * T

    # Row tile: cap at tile_m, sublane-aligned. No M-direction padding is
    # materialized; Pallas masks the ragged last row block (rows independent).
    tile_m_eff = min(tile_m, _round_up(M, SUBLANE))
    # For large problems make sure there are >= 2 row tiles so the "parallel"
    # grid axis can feed both v7x TensorCores.
    if M > 2 * LANE and pl.cdiv(M, tile_m_eff) < 2:
        tile_m_eff = _round_up(pl.cdiv(M, 2), SUBLANE)
    grid_m = pl.cdiv(M, tile_m_eff)

    # Activations: feature-dim pad (198 -> 256) fused with the bf16 cast.
    # Single cheap pass over x; no (M, C_PAD) zero-init + scatter copy.
    x2d = x.reshape(M, C)
    xp = jnp.pad(x2d, ((0, 0), (0, C_PAD - C))).astype(jnp.bfloat16)

    # Advisory cost estimate (real, unpadded problem).
    flops = 2 * M * (C * HIDDEN + HIDDEN * C)
    bytes_accessed = (2 * xp.size + 2 * w1p.size + 2 * w2p.size
                      + 4 * b1p.size + 4 * b2p.size + 4 * M * C_PAD)

    out2d = pl.pallas_call(
        feedforward_kernel,
        out_shape=jax.ShapeDtypeStruct((M, C_PAD), jnp.float32),
        grid_spec=pltpu.PrefetchScalarGridSpec(
            num_scalar_prefetch=0,
            grid=(grid_m,),
            in_specs=[
                # Streamed activation tile (double-buffered by default).
                pl.BlockSpec((tile_m_eff, C_PAD), lambda i: (i, 0)),
                # Weights / biases: VMEM-resident (constant index_map), never
                # re-DMA'd -> single buffer is enough.
                pl.BlockSpec((C_PAD, H_PAD), lambda i: (0, 0),
                             pipeline_mode=pl.Buffered(1)),
                pl.BlockSpec((1, H_PAD), lambda i: (0, 0),
                             pipeline_mode=pl.Buffered(1)),
                pl.BlockSpec((H_PAD, C_PAD), lambda i: (0, 0),
                             pipeline_mode=pl.Buffered(1)),
                pl.BlockSpec((1, C_PAD), lambda i: (0, 0),
                             pipeline_mode=pl.Buffered(1)),
            ],
            out_specs=pl.BlockSpec((tile_m_eff, C_PAD), lambda i: (i, 0)),
        ),
        compiler_params=pltpu.CompilerParams(
            # Independent row tiles -> shard across TCs on v7x; harmless on
            # single-TC v5e/v6e. 48 MiB scoped VMEM covers the 1024-row tile
            # on every generation (v7x: 64 MiB/TC physical; v5e default is
            # only 16 MiB so the explicit limit matters there).
            dimension_semantics=("parallel",),
            vmem_limit_bytes=48 * 1024 * 1024,
        ),
        cost_estimate=pl.CostEstimate(
            flops=flops, transcendentals=0, bytes_accessed=bytes_accessed),
    )(xp, w1p, b1p, w2p, b2p)

    return out2d[:, :C].reshape(B, T, C)


def init_params(key, n_embd=N_EMBD):
    """Deterministic init mimicking PyTorch Linear: U(-1/sqrt(fan_in), ...)."""
    k1, k2, k3, k4 = jax.random.split(key, 4)
    hidden = 4 * n_embd
    bound1 = 1.0 / jnp.sqrt(n_embd)
    bound2 = 1.0 / jnp.sqrt(hidden)
    # Stored as (in, out) so the kernel computes x @ W (== x @ W_pt.T).
    w1 = jax.random.uniform(k1, (n_embd, hidden), jnp.float32, -bound1, bound1)
    b1 = jax.random.uniform(k2, (1, hidden), jnp.float32, -bound1, bound1)
    w2 = jax.random.uniform(k3, (hidden, n_embd), jnp.float32, -bound2, bound2)
    b2 = jax.random.uniform(k4, (1, n_embd), jnp.float32, -bound2, bound2)
    return w1, b1, w2, b2


if __name__ == "__main__":
    key = jax.random.PRNGKey(0)
    kx, kp = jax.random.split(key)

    B, T = 2, 8  # small shapes; C = n_embd = 198
    x = jax.random.normal(kx, (B, T, N_EMBD), jnp.float32)
    w1, b1, w2, b2 = init_params(kp)

    padded_params = pad_params(w1, b1, w2, b2)   # hoisted, one-time
    out = feedforward(x, padded_params)
    out = jax.block_until_ready(out)

    # Reference in plain JAX f32 (dropout is identity at inference). The
    # kernel uses bf16 MXU operands with f32 accumulation, so allow a
    # bf16-level tolerance.
    ref = jnp.maximum(x.reshape(-1, N_EMBD) @ w1 + b1, 0.0) @ w2 + b2
    ref = ref.reshape(B, T, N_EMBD)
    assert out.shape == (B, T, N_EMBD)
    assert out.dtype == jnp.float32
    max_err = float(jnp.max(jnp.abs(out - ref)))
    assert jnp.allclose(out, ref, atol=3e-2, rtol=3e-2), max_err

    print("KERNEL_OK")
</pallas_src>

<mosaic_0001>
module attributes {stable_mosaic.version = 11 : i64} {
  func.func @feedforward_kernel(%arg0: i32, %arg1: memref<16x256xbf16, #tpu.memory_space<vmem>>, %arg2: memref<256x896xbf16, #tpu.memory_space<vmem>>, %arg3: memref<1x896xf32, #tpu.memory_space<vmem>>, %arg4: memref<896x256xbf16, #tpu.memory_space<vmem>>, %arg5: memref<1x256xf32, #tpu.memory_space<vmem>>, %arg6: memref<16x256xf32, #tpu.memory_space<vmem>>) attributes {dimension_semantics = [#tpu.dimension_semantics<parallel>], iteration_bounds = array<i64: 1>, scalar_prefetch = 0 : i64, scratch_operands = 0 : i64, tpu.core_type = #tpu.core_type<tc>, window_params = [{transform_indices = @transform_0, window_bounds = array<i64: 16, 256>}, {pipeline_mode = #tpu.pipeline_mode<synchronous>, transform_indices = @transform_1, window_bounds = array<i64: 256, 896>}, {pipeline_mode = #tpu.pipeline_mode<synchronous>, transform_indices = @transform_2, window_bounds = array<i64: 1, 896>}, {pipeline_mode = #tpu.pipeline_mode<synchronous>, transform_indices = @transform_3, window_bounds = array<i64: 896, 256>}, {pipeline_mode = #tpu.pipeline_mode<synchronous>, transform_indices = @transform_4, window_bounds = array<i64: 1, 256>}, {transform_indices = @transform_5, window_bounds = array<i64: 16, 256>}]} {
    %c0 = arith.constant 0 : index
    %c0_0 = arith.constant 0 : index
    %0 = vector.load %arg1[%c0, %c0_0] : memref<16x256xbf16, #tpu.memory_space<vmem>>, vector<16x256xbf16>
    %c0_1 = arith.constant 0 : index
    %c0_2 = arith.constant 0 : index
    %1 = vector.load %arg2[%c0_1, %c0_2] : memref<256x896xbf16, #tpu.memory_space<vmem>>, vector<256x896xbf16>
    %cst = arith.constant dense<0.000000e+00> : vector<16x896xf32>
    %2 = tpu.matmul %0, %1, %cst {dimension_numbers = #tpu.dot_dimension_numbers<[1], [0], [0], [1], [0, 0, 1, 1], [], []>} : vector<16x256xbf16>, vector<256x896xbf16>, vector<16x896xf32> -> vector<16x896xf32>
    %c0_3 = arith.constant 0 : index
    %c0_4 = arith.constant 0 : index
    %3 = vector.load %arg3[%c0_3, %c0_4] : memref<1x896xf32, #tpu.memory_space<vmem>>, vector<1x896xf32>
    %4 = vector.broadcast %3 : vector<1x896xf32> to vector<16x896xf32>
    %5 = arith.addf %2, %4 : vector<16x896xf32>
    %cst_5 = arith.constant 0.000000e+00 : f32
    %6 = vector.broadcast %cst_5 : f32 to vector<16x896xf32>
    %7 = arith.maximumf %5, %6 : vector<16x896xf32>
    %8 = arith.truncf %7 : vector<16x896xf32> to vector<16x896xbf16>
    %c0_6 = arith.constant 0 : index
    %c0_7 = arith.constant 0 : index
    %9 = vector.load %arg4[%c0_6, %c0_7] : memref<896x256xbf16, #tpu.memory_space<vmem>>, vector<896x256xbf16>
    %cst_8 = arith.constant dense<0.000000e+00> : vector<16x256xf32>
    %10 = tpu.matmul %8, %9, %cst_8 {dimension_numbers = #tpu.dot_dimension_numbers<[1], [0], [0], [1], [0, 0, 1, 1], [], []>} : vector<16x896xbf16>, vector<896x256xbf16>, vector<16x256xf32> -> vector<16x256xf32>
    %c0_9 = arith.constant 0 : index
    %c0_10 = arith.constant 0 : index
    %11 = vector.load %arg5[%c0_9, %c0_10] : memref<1x256xf32, #tpu.memory_space<vmem>>, vector<1x256xf32>
    %12 = vector.broadcast %11 : vector<1x256xf32> to vector<16x256xf32>
    %13 = arith.addf %10, %12 : vector<16x256xf32>
    %c0_11 = arith.constant 0 : index
    %c0_12 = arith.constant 0 : index
    %14 = vector.load %arg6[%c0_11, %c0_12] : memref<16x256xf32, #tpu.memory_space<vmem>>, vector<16x256xf32>
    tpu.vector_store %arg6[%c0_11, %c0_12], %13 {strides = array<i32>} : memref<16x256xf32, #tpu.memory_space<vmem>>, vector<16x256xf32>,
    return
  }
  func.func @transform_0(%arg0: i32) -> (i32, i32) {
    %c0_i32 = arith.constant 0 : i32
    %c0_i32_0 = arith.constant 0 : i32
    return %arg0, %c0_i32 : i32, i32
  }
  func.func @transform_1(%arg0: i32) -> (i32, i32) {
    %c0_i32 = arith.constant 0 : i32
    %c0_i32_0 = arith.constant 0 : i32
    %c0_i32_1 = arith.constant 0 : i32
    return %c0_i32, %c0_i32_0 : i32, i32
  }
  func.func @transform_2(%arg0: i32) -> (i32, i32) {
    %c0_i32 = arith.constant 0 : i32
    %c0_i32_0 = arith.constant 0 : i32
    %c0_i32_1 = arith.constant 0 : i32
    return %c0_i32, %c0_i32_0 : i32, i32
  }
  func.func @transform_3(%arg0: i32) -> (i32, i32) {
    %c0_i32 = arith.constant 0 : i32
    %c0_i32_0 = arith.constant 0 : i32
    %c0_i32_1 = arith.constant 0 : i32
    return %c0_i32, %c0_i32_0 : i32, i32
  }
  func.func @transform_4(%arg0: i32) -> (i32, i32) {
    %c0_i32 = arith.constant 0 : i32
    %c0_i32_0 = arith.constant 0 : i32
    %c0_i32_1 = arith.constant 0 : i32
    return %c0_i32, %c0_i32_0 : i32, i32
  }
  func.func @transform_5(%arg0: i32) -> (i32, i32) {
    %c0_i32 = arith.constant 0 : i32
    %c0_i32_0 = arith.constant 0 : i32
    return %arg0, %c0_i32 : i32, i32
  }
}

</mosaic_0001>

<bundles_post_ra>
// kernel: tpu_custom_call.1
= control target key start
LH: loop header
LB: loop body
LE: loop exit
PB: predicated region body
PF: predicated region fallthrough
CT: control target
= control target key end

     0   :  { %10 = vsyncpa [#allocation3], 0  ;;  %s3305_s0 = inlined_call_operand.hbm [shape: bf16[16,256], index: 0, kind: input, shape index: {}]   ;;  %s3306_s1 = inlined_call_operand.hbm [shape: bf16[256,896], index: 1, kind: input, shape index: {}]   ;;  %s3307_s2 = inlined_call_operand.hbm [shape: f32[1,896], index: 2, kind: input, shape index: {}]   ;;  %s3308_s3 = inlined_call_operand.hbm [shape: bf16[896,256], index: 3, kind: input, shape index: {}]   ;;  %s3309_s4 = inlined_call_operand.vmem [shape: f32[1,256], index: 4, kind: input, shape index: {}]   ;;  %s3310_s5 = inlined_call_operand.hbm [shape: f32[16,256], index: 5, kind: output, shape index: {}]  }
   0x1   :  { %11 = vsyncpa [#allocation6], 0 }
   0x2   :  { %12 = vsyncpa [#allocation9], 0  ;;  %s31_s20 = sshll.u32 %s3306_s1, 4  ;;  %s32_s20 = int_to_ptr.hbm [resolvable:$true] %s31_s20 }
   0x3   :  { %13 = vsyncpa [#allocation4], 0  ;;  %s3199_s21 = smov [#allocation5]   ;;  %s18_s25 = sshll.u32 %s3305_s0, 4  ;;  %s19_s25 = int_to_ptr.hbm [resolvable:$true] %s18_s25 }
   0x4   :  { %s33_s22 = sshll.u32 %s3199_s21, 4  ;;  %s3200_s26 = smov 448   ;;  %s34_s22 = int_to_ptr.vmem [resolvable:$true] %s33_s22 }
   0x5   :  { %s3201_s27 = smov 28   ;;  %s3202_s28 = smov [#allocation2]  }
   0x6   :  { %39 = dma.hbm_to_vmem [thread:$0]  %s32_s20, 14336, %s34_s22, [#allocation6], %s3200_s26, %s3200_s26, %s3201_s27  }
   0x7   :  { %s20_s29 = sshll.u32 %s3202_s28, 4  ;;  %s3203_s30 = smov 128   ;;  %s21_s29 = int_to_ptr.vmem [resolvable:$true] %s20_s29 }
   0x8   :  { %s3204_s6 = smov 8   ;;  %s45_s8 = sshll.u32 %s3307_s2, 4  ;;  %s46_s8 = int_to_ptr.hbm [resolvable:$true] %s45_s8 }
   0x9   :  { %26 = dma.hbm_to_vmem [thread:$0]  %s19_s25, 256, %s21_s29, [#allocation3], %s3203_s30, %s3203_s30, %s3204_s6  }
   0xa   :  { %s3205_s9 = smov [#allocation7]   ;;  %s55_s12 = sshll.u32 %s3308_s3, 4  ;;  %s56_s12 = int_to_ptr.hbm [resolvable:$true] %s55_s12 }
   0xb   :  { %s47_s10 = sshll.u32 %s3205_s9, 4  ;;  %s3206_s13 = smov [#allocation8]   ;;  %s48_s10 = int_to_ptr.vmem [resolvable:$true] %s47_s10 }
   0xc   :  { %50 = dma.hbm_to_vmem [thread:$0]  %s46_s8, 112, %s48_s10, [#allocation6]  }
   0xd   :  { %s57_s14 = sshll.u32 %s3206_s13, 4  ;;  %s58_s14 = int_to_ptr.vmem [resolvable:$true] %s57_s14 }
   0xe   :  { %63 = dma.hbm_to_vmem [thread:$0]  %s56_s12, 14336, %s58_s14, [#allocation9], %s3203_s30, %s3203_s30, %s3204_s6  }
   0xf   :  { %3191 = dma.done.wait [#allocation3], 256  }
  0x10   :  { %3192 = vsyncadd [#allocation3], 4294967040 }
  0x11   :  { %3193 = dma.done.wait [#allocation6], 14448  }
  0x12   :  { %3194 = vsyncadd [#allocation6], 4294952848 }
  0x13   :  { %3195 = dma.done.wait [#allocation9], 14336  }
  0x14   :  { %3196 = vsyncadd [#allocation9], 4294952960  ;;  %v2136_v0 = vld [vmem:[#allocation5 + $0x188] sm:$0xf]  ;;  %v2888_v1 = vld [vmem:[#allocation5 + $0x1a0] sm:$0xf0] }
  0x15   :  { %v2360_v2 = vld [vmem:[#allocation5 + $0x348] sm:$0xf]  ;;  %v2137_v3 = vor.u32 %v2888_v1, %v2136_v0  ;;  %v2944_v4 = vld [vmem:[#allocation5 + $0x360] sm:$0xf0]  ;;  %v2885_v5 = vld [vmem:[#allocation5 + $0x18c] sm:$0xf] }
  0x16   :  { %v2138_v6 = vld [vmem:[#allocation5 + $0x1a4] sm:$0xf0]  ;;  %v2361_v7 = vor.u32 %v2944_v4, %v2360_v2  ;;  %v2941_v9 = vld [vmem:[#allocation5 + $0x34c] sm:$0xf]  ;;  %v2108_v11 = vld [vmem:[#allocation5 + $0x150] sm:$0xf] }
  0x17   :  { %v2141_v8 = vor.u32 %v2885_v5, %v2138_v6  ;;  %v2362_v10 = vld [vmem:[#allocation5 + $0x364] sm:$0xf0]  ;;  %814 = vmatpush.bf16.msra.mxu0 %v2137_v3  ;;  %v2881_v13 = vld [vmem:[#allocation5 + $0x168] sm:$0xf0]  ;;  %v2332_v14 = vld [vmem:[#allocation5 + $0x310] sm:$0xf] }
  0x18   :  { %v2365_v12 = vor.u32 %v2941_v9, %v2362_v10  ;;  %v2937_v15 = vld [vmem:[#allocation5 + $0x328] sm:$0xf0]  ;;  %828 = vmatpush.bf16.msra.mxu1 %v2361_v7  ;;  %v2109_v16 = vor.u32 %v2881_v13, %v2108_v11  ;;  %v2878_v18 = vld [vmem:[#allocation5 + $0x154] sm:$0xf]  ;;  %v2110_v19 = vld [vmem:[#allocation5 + $0x16c] sm:$0xf0] }
  0x19   :  { %842 = vmatpush.bf16.msra.mxu2 %v2141_v8  ;;  %v2333_v17 = vor.u32 %v2937_v15, %v2332_v14  ;;  %v2934_v20 = vld [vmem:[#allocation5 + $0x314] sm:$0xf]  ;;  %v2113_v21 = vor.u32 %v2878_v18, %v2110_v19  ;;  %v2334_v22 = vld [vmem:[#allocation5 + $0x32c] sm:$0xf0]  ;;  %v2080_v23 = vld [vmem:[#allocation5 + $0x118] sm:$0xf] }
  0x1a   :  { %856 = vmatpush.bf16.msra.mxu3 %v2365_v12  ;;  %v2874_v24 = vld [vmem:[#allocation5 + $0x130] sm:$0xf0]  ;;  %v2337_v25 = vor.u32 %v2934_v20, %v2334_v22  ;;  %v2304_v26 = vld [vmem:[#allocation5 + $0x2d8] sm:$0xf]  ;;  %v2871_v28 = vld [vmem:[#allocation5 + $0x11c] sm:$0xf] }
  0x1b   :  { %v2930_v27 = vld [vmem:[#allocation5 + $0x2f0] sm:$0xf0]  ;;  %815 = vmatpush.bf16.msra.mxu0 %v2109_v16  ;;  %v2081_v29 = vor.u32 %v2874_v24, %v2080_v23  ;;  %v2082_v30 = vld [vmem:[#allocation5 + $0x134] sm:$0xf0]  ;;  %v2927_v31 = vld [vmem:[#allocation5 + $0x2dc] sm:$0xf] }
  0x1c   :  { %v2306_v32 = vld [vmem:[#allocation5 + $0x2f4] sm:$0xf0]  ;;  %829 = vmatpush.bf16.msra.mxu1 %v2333_v17  ;;  %v2305_v33 = vor.u32 %v2930_v27, %v2304_v26  ;;  %v2085_v34 = vor.u32 %v2871_v28, %v2082_v30  ;;  %v2052_v35 = vld [vmem:[#allocation5 + $0xe0] sm:$0xf]  ;;  %v2867_v36 = vld [vmem:[#allocation5 + $0xf8] sm:$0xf0] }
  0x1d   :  { %843 = vmatpush.bf16.msra.mxu2 %v2113_v21  ;;  %v2276_v37 = vld [vmem:[#allocation5 + $0x2a0] sm:$0xf]  ;;  %v2309_v38 = vor.u32 %v2927_v31, %v2306_v32  ;;  %v2923_v39 = vld [vmem:[#allocation5 + $0x2b8] sm:$0xf0]  ;;  %v2864_v40 = vld [vmem:[#allocation5 + $0xe4] sm:$0xf]  ;;  %v2053_v44 = vor.u32 %v2867_v36, %v2052_v35 }
  0x1e   :  { %857 = vmatpush.bf16.msra.mxu3 %v2337_v25  ;;  %v2054_v41 = vld [vmem:[#allocation5 + $0xfc] sm:$0xf0]  ;;  %v2920_v42 = vld [vmem:[#allocation5 + $0x2a4] sm:$0xf]  ;;  %v2277_v45 = vor.u32 %v2923_v39, %v2276_v37  ;;  %v2024_v47 = vld [vmem:[#allocation5 + $0xa8] sm:$0xf] }
  0x1f   :  { %v2278_v43 = vld [vmem:[#allocation5 + $0x2bc] sm:$0xf0]  ;;  %816 = vmatpush.bf16.msra.mxu0 %v2081_v29  ;;  %v2057_v46 = vor.u32 %v2864_v40, %v2054_v41  ;;  %v2860_v48 = vld [vmem:[#allocation5 + $0xc0] sm:$0xf0]  ;;  %v2248_v49 = vld [vmem:[#allocation5 + $0x268] sm:$0xf] }
  0x20   :  { %830 = vmatpush.bf16.msra.mxu1 %v2305_v33  ;;  %v2281_v50 = vor.u32 %v2920_v42, %v2278_v43  ;;  %v2916_v51 = vld [vmem:[#allocation5 + $0x280] sm:$0xf0]  ;;  %v2857_v52 = vld [vmem:[#allocation5 + $0xac] sm:$0xf]  ;;  %v2026_v53 = vld [vmem:[#allocation5 + $0xc4] sm:$0xf0]  ;;  %v2025_v56 = vor.u32 %v2860_v48, %v2024_v47 }
  0x21   :  { %844 = vmatpush.bf16.msra.mxu2 %v2085_v34  ;;  %v2913_v54 = vld [vmem:[#allocation5 + $0x26c] sm:$0xf]  ;;  %v2250_v55 = vld [vmem:[#allocation5 + $0x284] sm:$0xf0]  ;;  %v2249_v57 = vor.u32 %v2916_v51, %v2248_v49  ;;  %v2029_v58 = vor.u32 %v2857_v52, %v2026_v53  ;;  %v1996_v59 = vld [vmem:[#allocation5 + $0x70] sm:$0xf] }
  0x22   :  { %858 = vmatpush.bf16.msra.mxu3 %v2309_v38  ;;  %v2853_v60 = vld [vmem:[#allocation5 + $0x88] sm:$0xf0]  ;;  %v2220_v61 = vld [vmem:[#allocation5 + $0x230] sm:$0xf]  ;;  %v2253_v62 = vor.u32 %v2913_v54, %v2250_v55  ;;  %v2850_v0 = vld [vmem:[#allocation5 + $0x74] sm:$0xf] }
  0x23   :  { %817 = vmatpush.bf16.msra.mxu0 %v2053_v44  ;;  %v2909_v63 = vld [vmem:[#allocation5 + $0x248] sm:$0xf0]  ;;  %v1998_v1 = vld [vmem:[#allocation5 + $0x8c] sm:$0xf0]  ;;  %v2906_v2 = vld [vmem:[#allocation5 + $0x234] sm:$0xf]  ;;  %v1997_v4 = vor.u32 %v2853_v60, %v1996_v59 }
  0x24   :  { %831 = vmatpush.bf16.msra.mxu1 %v2277_v45  ;;  %v2222_v3 = vld [vmem:[#allocation5 + $0x24c] sm:$0xf0]  ;;  %v2221_v5 = vor.u32 %v2909_v63, %v2220_v61  ;;  %v2001_v6 = vor.u32 %v2850_v0, %v1998_v1  ;;  %v1968_v7 = vld [vmem:[#allocation5 + $0x38] sm:$0xf]  ;;  %v2846_v8 = vld [vmem:[#allocation5 + $0x50] sm:$0xf0] }
  0x25   :  { %845 = vmatpush.bf16.msra.mxu2 %v2057_v46  ;;  %v2192_v9 = vld [vmem:[#allocation5 + $0x1f8] sm:$0xf]  ;;  %v2225_v10 = vor.u32 %v2906_v2, %v2222_v3  ;;  %v2902_v11 = vld [vmem:[#allocation5 + $0x210] sm:$0xf0]  ;;  %v2843_v12 = vld [vmem:[#allocation5 + $0x3c] sm:$0xf]  ;;  %v1969_v16 = vor.u32 %v2846_v8, %v1968_v7 }
  0x26   :  { %859 = vmatpush.bf16.msra.mxu3 %v2281_v50  ;;  %v1970_v13 = vld [vmem:[#allocation5 + $0x54] sm:$0xf0]  ;;  %v2899_v14 = vld [vmem:[#allocation5 + $0x1fc] sm:$0xf]  ;;  %v1940_v17 = vld [vmem:[#allocation5] sm:$0xf]  ;;  %v2193_v19 = vor.u32 %v2902_v11, %v2192_v9 }
  0x27   :  { %818 = vmatpush.bf16.msra.mxu0 %v2025_v56  ;;  %v2194_v15 = vld [vmem:[#allocation5 + $0x214] sm:$0xf0]  ;;  %v2839_v18 = vld [vmem:[#allocation5 + $0x18] sm:$0xf0]  ;;  %v1973_v20 = vor.u32 %v2843_v12, %v1970_v13  ;;  %v2164_v21 = vld [vmem:[#allocation5 + $0x1c0] sm:$0xf] }
  0x28   :  { %832 = vmatpush.bf16.msra.mxu1 %v2249_v57  ;;  %v2895_v22 = vld [vmem:[#allocation5 + $0x1d8] sm:$0xf0]  ;;  %v2836_v23 = vld [vmem:[#allocation5 + $0x4] sm:$0xf]  ;;  %v2197_v24 = vor.u32 %v2899_v14, %v2194_v15  ;;  %v1942_v25 = vld [vmem:[#allocation5 + $0x1c] sm:$0xf0]  ;;  %v1941_v31 = vor.u32 %v2839_v18, %v1940_v17 }
  0x29   :  { %846 = vmatpush.bf16.msra.mxu2 %v2029_v58  ;;  %v2892_v26 = vld [vmem:[#allocation5 + $0x1c4] sm:$0xf]  ;;  %v2166_v27 = vld [vmem:[#allocation5 + $0x1dc] sm:$0xf0]  ;;  %v2144_v28 = vld [vmem:[#allocation5 + $0x190] sm:$0xf]  ;;  %v2165_v35 = vor.u32 %v2895_v22, %v2164_v21  ;;  %v1945_v36 = vor.u32 %v2836_v23, %v1942_v25 }
  0x2a   :  { %860 = vmatpush.bf16.msra.mxu3 %v2253_v62  ;;  %v2889_v29 = vld [vmem:[#allocation5 + $0x1a8] sm:$0xf0]  ;;  %v2368_v30 = vld [vmem:[#allocation5 + $0x350] sm:$0xf]  ;;  %v2886_v33 = vld [vmem:[#allocation5 + $0x194] sm:$0xf]  ;;  %v2169_v40 = vor.u32 %v2892_v26, %v2166_v27 }
  0x2b   :  { %819 = vmatpush.bf16.msra.mxu0 %v1997_v4  ;;  %v2945_v32 = vld [vmem:[#allocation5 + $0x368] sm:$0xf0]  ;;  %v2146_v34 = vld [vmem:[#allocation5 + $0x1ac] sm:$0xf0]  ;;  %v2942_v37 = vld [vmem:[#allocation5 + $0x354] sm:$0xf]  ;;  %v2145_v41 = vor.u32 %v2889_v29, %v2144_v28 }
  0x2c   :  { %833 = vmatpush.bf16.msra.mxu1 %v2221_v5  ;;  %v2370_v38 = vld [vmem:[#allocation5 + $0x36c] sm:$0xf0]  ;;  %v2116_v42 = vld [vmem:[#allocation5 + $0x158] sm:$0xf]  ;;  %v2882_v43 = vld [vmem:[#allocation5 + $0x170] sm:$0xf0]  ;;  %v2369_v45 = vor.u32 %v2945_v32, %v2368_v30  ;;  %v2149_v46 = vor.u32 %v2886_v33, %v2146_v34 }
  0x2d   :  { %847 = vmatpush.bf16.msra.mxu2 %v2001_v6  ;;  %v1932_v39 = vld [vmem:[#allocation2] sm:$0xf]  ;;  %v2835_v44 = vld [vmem:[#allocation2 + $0x4] sm:$0xf0]  ;;  %v2834_v48 = vld [vmem:[#allocation2 + $0x4] sm:$0xf]  ;;  %v2373_v50 = vor.u32 %v2942_v37, %v2370_v38  ;;  %v2117_v58 = vor.u32 %v2882_v43, %v2116_v42 }
  0x2e   :  { %861 = vmatpush.bf16.msra.mxu3 %v2225_v10  ;;  %v2340_v47 = vld [vmem:[#allocation5 + $0x318] sm:$0xf]  ;;  %v1934_v49 = vld [vmem:[#allocation2 + $0x8] sm:$0xf0]  ;;  %v2938_v51 = vld [vmem:[#allocation5 + $0x330] sm:$0xf0]  ;;  %v3252_v54 = vor.u32 %v2835_v44, %v1932_v39 }
  0x2f   :  { %820 = vmatpush.bf16.msra.mxu0 %v1969_v16  ;;  %v2879_v52 = vld [vmem:[#allocation5 + $0x15c] sm:$0xf]  ;;  %v2118_v53 = vld [vmem:[#allocation5 + $0x174] sm:$0xf0]  ;;  %v3254_v57 = vor.u32 %v2834_v48, %v1934_v49  ;;  %v2341_v59 = vor.u32 %v2938_v51, %v2340_v47  ;;  %v2088_v61 = vld [vmem:[#allocation5 + $0x120] sm:$0xf] }
  0x30   :  { %834 = vmatpush.bf16.msra.mxu1 %v2193_v19  ;;  %v2935_v55 = vld [vmem:[#allocation5 + $0x31c] sm:$0xf]  ;;  %v2342_v56 = vld [vmem:[#allocation5 + $0x334] sm:$0xf0]  ;;  %v2121_v60 = vor.u32 %v2879_v52, %v2118_v53  ;;  %v2312_v63 = vld [vmem:[#allocation5 + $0x2e0] sm:$0xf] }
  0x31   :  { %848 = vmatpush.bf16.msra.mxu2 %v1973_v20  ;;  %v2875_v62 = vld [vmem:[#allocation5 + $0x138] sm:$0xf0]  ;;  %v2345_v0 = vor.u32 %v2935_v55, %v2342_v56  ;;  %v2872_v2 = vld [vmem:[#allocation5 + $0x124] sm:$0xf]  ;;  %v2090_v3 = vld [vmem:[#allocation5 + $0x13c] sm:$0xf0] }
  0x32   :  { %862 = vmatpush.bf16.msra.mxu3 %v2197_v24  ;;  %v2931_v1 = vld [vmem:[#allocation5 + $0x2f8] sm:$0xf0]  ;;  %v2928_v4 = vld [vmem:[#allocation5 + $0x2e4] sm:$0xf]  ;;  %v2314_v5 = vld [vmem:[#allocation5 + $0x2fc] sm:$0xf0]  ;;  %v2089_v6 = vor.u32 %v2875_v62, %v2088_v61  ;;  %v2093_v8 = vor.u32 %v2872_v2, %v2090_v3 }
  0x33   :  { %821 = vmatpush.bf16.msra.mxu0 %v1941_v31  ;;  %v2313_v7 = vor.u32 %v2931_v1, %v2312_v63  ;;  %v2060_v9 = vld [vmem:[#allocation5 + $0xe8] sm:$0xf]  ;;  %v2868_v10 = vld [vmem:[#allocation5 + $0x100] sm:$0xf0]  ;;  %v2317_v12 = vor.u32 %v2928_v4, %v2314_v5  ;;  %v2865_v14 = vld [vmem:[#allocation5 + $0xec] sm:$0xf] }
  0x34   :  { %835 = vmatpush.bf16.msra.mxu1 %v2165_v35  ;;  %v2284_v11 = vld [vmem:[#allocation5 + $0x2a8] sm:$0xf]  ;;  %v2924_v13 = vld [vmem:[#allocation5 + $0x2c0] sm:$0xf0]  ;;  %v2921_v16 = vld [vmem:[#allocation5 + $0x2ac] sm:$0xf]  ;;  %v2061_v18 = vor.u32 %v2868_v10, %v2060_v9 }
  0x35   :  { %849 = vmatpush.bf16.msra.mxu2 %v1945_v36  ;;  %v2062_v15 = vld [vmem:[#allocation5 + $0x104] sm:$0xf0]  ;;  %v2285_v19 = vor.u32 %v2924_v13, %v2284_v11  ;;  %v2032_v21 = vld [vmem:[#allocation5 + $0xb0] sm:$0xf]  ;;  %v2861_v22 = vld [vmem:[#allocation5 + $0xc8] sm:$0xf0] }
  0x36   :  { %863 = vmatpush.bf16.msra.mxu3 %v2169_v40  ;;  %822 = vmatmul.bf16.vlgmr.msra.gmra.mxu0 %v3252_v54  ;;  %v2286_v17 = vld [vmem:[#allocation5 + $0x2c4] sm:$0xf0]  ;;  %v2065_v20 = vor.u32 %v2865_v14, %v2062_v15  ;;  %v2256_v23 = vld [vmem:[#allocation5 + $0x270] sm:$0xf]  ;;  %v2917_v25 = vld [vmem:[#allocation5 + $0x288] sm:$0xf0]  ;;  %v2033_v30 = vor.u32 %v2861_v22, %v2032_v21 }
  0x37   :  { %870 = vmatpush.bf16.msrb.mxu0 %v2145_v41  ;;  %836 = vmatmul.bf16.vlgmr.msra.gmra.mxu1 %v3254_v57  ;;  %v2289_v24 = vor.u32 %v2921_v16, %v2286_v17  ;;  %v2858_v26 = vld [vmem:[#allocation5 + $0xb4] sm:$0xf]  ;;  %v2034_v27 = vld [vmem:[#allocation5 + $0xcc] sm:$0xf0]  ;;  %v2257_v31 = vor.u32 %v2917_v25, %v2256_v23  ;;  %v2004_v33 = vld [vmem:[#allocation5 + $0x78] sm:$0xf] }
  0x38   :  { %884 = vmatpush.bf16.msrb.mxu1 %v2369_v45  ;;  %850 = vmatmul.bf16.vlgmr.msra.gmra.mxu2 %v3252_v54  ;;  %v2914_v28 = vld [vmem:[#allocation5 + $0x274] sm:$0xf]  ;;  %v2258_v29 = vld [vmem:[#allocation5 + $0x28c] sm:$0xf0]  ;;  %v2037_v32 = vor.u32 %v2858_v26, %v2034_v27  ;;  %v2228_v35 = vld [vmem:[#allocation5 + $0x238] sm:$0xf] }
  0x39   :  { %898 = vmatpush.bf16.msrb.mxu2 %v2149_v46  ;;  %864 = vmatmul.bf16.vlgmr.msra.gmra.mxu3 %v3254_v57  ;;  %v2854_v34 = vld [vmem:[#allocation5 + $0x90] sm:$0xf0]  ;;  %v2261_v36 = vor.u32 %v2914_v28, %v2258_v29  ;;  %v2851_v38 = vld [vmem:[#allocation5 + $0x7c] sm:$0xf]  ;;  %v2006_v39 = vld [vmem:[#allocation5 + $0x94] sm:$0xf0] }
  0x3a   :  { %912 = vmatpush.bf16.msrb.mxu3 %v2373_v50  ;;  %v2910_v37 = vld [vmem:[#allocation5 + $0x250] sm:$0xf0]  ;;  %v2907_v40 = vld [vmem:[#allocation5 + $0x23c] sm:$0xf]  ;;  %v2230_v41 = vld [vmem:[#allocation5 + $0x254] sm:$0xf0]  ;;  %v2005_v42 = vor.u32 %v2854_v34, %v2004_v33  ;;  %v2009_v44 = vor.u32 %v2851_v38, %v2006_v39 }
  0x3b   :  { %871 = vmatpush.bf16.msrb.mxu0 %v2117_v58  ;;  %v2229_v43 = vor.u32 %v2910_v37, %v2228_v35  ;;  %v1976_v45 = vld [vmem:[#allocation5 + $0x40] sm:$0xf]  ;;  %v2847_v46 = vld [vmem:[#allocation5 + $0x58] sm:$0xf0]  ;;  %v2233_v48 = vor.u32 %v2907_v40, %v2230_v41  ;;  %v2844_v50 = vld [vmem:[#allocation5 + $0x44] sm:$0xf] }
  0x3c   :  { %885 = vmatpush.bf16.msrb.mxu1 %v2341_v59  ;;  %v2200_v47 = vld [vmem:[#allocation5 + $0x200] sm:$0xf]  ;;  %v2903_v49 = vld [vmem:[#allocation5 + $0x218] sm:$0xf0]  ;;  %v2900_v52 = vld [vmem:[#allocation5 + $0x204] sm:$0xf]  ;;  %v1977_v55 = vor.u32 %v2847_v46, %v1976_v45 }
  0x3d   :  { %899 = vmatpush.bf16.msrb.mxu2 %v2121_v60  ;;  %v1978_v51 = vld [vmem:[#allocation5 + $0x5c] sm:$0xf0]  ;;  %v1948_v56 = vld [vmem:[#allocation5 + $0x8] sm:$0xf]  ;;  %v2840_v58 = vld [vmem:[#allocation5 + $0x20] sm:$0xf0]  ;;  %v2201_v59 = vor.u32 %v2903_v49, %v2200_v47 }
  0x3e   :  { %913 = vmatpush.bf16.msrb.mxu3 %v2345_v0  ;;  %v2202_v53 = vld [vmem:[#allocation5 + $0x21c] sm:$0xf0]  ;;  %v1981_v60 = vor.u32 %v2844_v50, %v1978_v51  ;;  %v2172_v61 = vld [vmem:[#allocation5 + $0x1c8] sm:$0xf]  ;;  %v2896_v62 = vld [vmem:[#allocation5 + $0x1e0] sm:$0xf0] }
  0x3f   :  { %872 = vmatpush.bf16.msrb.mxu0 %v2089_v6  ;;  %v2837_v63 = vld [vmem:[#allocation5 + $0xc] sm:$0xf]  ;;  %v2205_v0 = vor.u32 %v2900_v52, %v2202_v53  ;;  %v1950_v1 = vld [vmem:[#allocation5 + $0x24] sm:$0xf0]  ;;  %v2152_v4 = vld [vmem:[#allocation5 + $0x198] sm:$0xf]  ;;  %v2173_v11 = vor.u32 %v2896_v62, %v2172_v61 }
  0x40   :  { %886 = vmatpush.bf16.msrb.mxu1 %v2313_v7  ;;  %v2893_v2 = vld [vmem:[#allocation5 + $0x1cc] sm:$0xf]  ;;  %v2174_v3 = vld [vmem:[#allocation5 + $0x1e4] sm:$0xf0]  ;;  %v2890_v5 = vld [vmem:[#allocation5 + $0x1b0] sm:$0xf0]  ;;  %v1949_v7 = vor.u32 %v2840_v58, %v1948_v56 }
  0x41   :  { %900 = vmatpush.bf16.msrb.mxu2 %v2093_v8  ;;  %v2376_v6 = vld [vmem:[#allocation5 + $0x358] sm:$0xf]  ;;  %v2946_v8 = vld [vmem:[#allocation5 + $0x370] sm:$0xf0]  ;;  %v2887_v9 = vld [vmem:[#allocation5 + $0x19c] sm:$0xf]  ;;  %v2177_v15 = vor.u32 %v2893_v2, %v2174_v3  ;;  %v2153_v16 = vor.u32 %v2890_v5, %v2152_v4 }
  0x42   :  { %914 = vmatpush.bf16.msrb.mxu3 %v2317_v12  ;;  %v2154_v10 = vld [vmem:[#allocation5 + $0x1b4] sm:$0xf0]  ;;  %v1953_v12 = vor.u32 %v2837_v63, %v1950_v1  ;;  %v2943_v13 = vld [vmem:[#allocation5 + $0x35c] sm:$0xf]  ;;  %v2377_v17 = vor.u32 %v2946_v8, %v2376_v6  ;;  %v2348_v21 = vld [vmem:[#allocation5 + $0x320] sm:$0xf] }
  0x43   :  { %873 = vmatpush.bf16.msrb.mxu0 %v2061_v18  ;;  %v2378_v14 = vld [vmem:[#allocation5 + $0x374] sm:$0xf0]  ;;  %v2157_v18 = vor.u32 %v2887_v9, %v2154_v10  ;;  %v2939_v23 = vld [vmem:[#allocation5 + $0x338] sm:$0xf0]  ;;  %v2126_v25 = vld [vmem:[#allocation5 + $0x17c] sm:$0xf0] }
  0x44   :  { %887 = vmatpush.bf16.msrb.mxu1 %v2285_v19  ;;  %v2124_v19 = vld [vmem:[#allocation5 + $0x160] sm:$0xf]  ;;  %v2381_v22 = vor.u32 %v2943_v13, %v2378_v14  ;;  %v2936_v26 = vld [vmem:[#allocation5 + $0x324] sm:$0xf]  ;;  %v2349_v29 = vor.u32 %v2939_v23, %v2348_v21  ;;  %v2320_v33 = vld [vmem:[#allocation5 + $0x2e8] sm:$0xf] }
  0x45   :  { %901 = vmatpush.bf16.msrb.mxu2 %v2065_v20  ;;  %v2883_v20 = vld [vmem:[#allocation5 + $0x178] sm:$0xf0]  ;;  %v2350_v27 = vld [vmem:[#allocation5 + $0x33c] sm:$0xf0]  ;;  %v2932_v35 = vld [vmem:[#allocation5 + $0x300] sm:$0xf0] }
  0x46   :  { %915 = vmatpush.bf16.msrb.mxu3 %v2289_v24  ;;  %v2880_v24 = vld [vmem:[#allocation5 + $0x164] sm:$0xf]  ;;  %v2125_v28 = vor.u32 %v2883_v20, %v2124_v19  ;;  %v2353_v34 = vor.u32 %v2936_v26, %v2350_v27  ;;  %v2098_v37 = vld [vmem:[#allocation5 + $0x144] sm:$0xf0]  ;;  %v2929_v38 = vld [vmem:[#allocation5 + $0x2ec] sm:$0xf]  ;;  %v2321_v41 = vor.u32 %v2932_v35, %v2320_v33 }
  0x47   :  { %874 = vmatpush.bf16.msrb.mxu0 %v2033_v30  ;;  %v2129_v30 = vor.u32 %v2880_v24, %v2126_v25  ;;  %v2322_v39 = vld [vmem:[#allocation5 + $0x304] sm:$0xf0]  ;;  %v2292_v45 = vld [vmem:[#allocation5 + $0x2b0] sm:$0xf]  ;;  %v2925_v47 = vld [vmem:[#allocation5 + $0x2c8] sm:$0xf0] }
  0x48   :  { %888 = vmatpush.bf16.msrb.mxu1 %v2257_v31  ;;  %v2096_v31 = vld [vmem:[#allocation5 + $0x128] sm:$0xf]  ;;  %v2325_v46 = vor.u32 %v2929_v38, %v2322_v39  ;;  %v2070_v49 = vld [vmem:[#allocation5 + $0x10c] sm:$0xf0]  ;;  %v2922_v50 = vld [vmem:[#allocation5 + $0x2b4] sm:$0xf]  ;;  %v2293_v53 = vor.u32 %v2925_v47, %v2292_v45 }
  0x49   :  { %902 = vmatpush.bf16.msrb.mxu2 %v2037_v32  ;;  %v2876_v32 = vld [vmem:[#allocation5 + $0x140] sm:$0xf0]  ;;  %v2294_v51 = vld [vmem:[#allocation5 + $0x2cc] sm:$0xf0]  ;;  %v2040_v56 = vld [vmem:[#allocation5 + $0xb8] sm:$0xf] }
  0x4a   :  { %916 = vmatpush.bf16.msrb.mxu3 %v2261_v36  ;;  %v2873_v36 = vld [vmem:[#allocation5 + $0x12c] sm:$0xf]  ;;  %v2097_v40 = vor.u32 %v2876_v32, %v2096_v31  ;;  %v2862_v58 = vld [vmem:[#allocation5 + $0xd0] sm:$0xf0]  ;;  %v2859_v62 = vld [vmem:[#allocation5 + $0xbc] sm:$0xf] }
  0x4b   :  { %875 = vmatpush.bf16.msrb.mxu0 %v2005_v42  ;;  %v2101_v42 = vor.u32 %v2873_v36, %v2098_v37  ;;  %v2918_v61 = vld [vmem:[#allocation5 + $0x290] sm:$0xf0]  ;;  %v2042_v63 = vld [vmem:[#allocation5 + $0xd4] sm:$0xf0]  ;;  %v2041_v2 = vor.u32 %v2862_v58, %v2040_v56  ;;  %v2012_v5 = vld [vmem:[#allocation5 + $0x80] sm:$0xf] }
  0x4c   :  { %889 = vmatpush.bf16.msrb.mxu1 %v2229_v43  ;;  %v2068_v43 = vld [vmem:[#allocation5 + $0xf0] sm:$0xf]  ;;  %v2266_v1 = vld [vmem:[#allocation5 + $0x294] sm:$0xf0]  ;;  %v2045_v4 = vor.u32 %v2859_v62, %v2042_v63  ;;  %v2855_v6 = vld [vmem:[#allocation5 + $0x98] sm:$0xf0] }
  0x4d   :  { %903 = vmatpush.bf16.msrb.mxu2 %v2009_v44  ;;  %v2869_v44 = vld [vmem:[#allocation5 + $0x108] sm:$0xf0]  ;;  %v2911_v9 = vld [vmem:[#allocation5 + $0x258] sm:$0xf0]  ;;  %v2852_v10 = vld [vmem:[#allocation5 + $0x84] sm:$0xf]  ;;  %v2013_v14 = vor.u32 %v2855_v6, %v2012_v5 }
  0x4e   :  { %917 = vmatpush.bf16.msrb.mxu3 %v2233_v48  ;;  %v2866_v48 = vld [vmem:[#allocation5 + $0xf4] sm:$0xf]  ;;  %v2069_v52 = vor.u32 %v2869_v44, %v2068_v43  ;;  %v2238_v13 = vld [vmem:[#allocation5 + $0x25c] sm:$0xf0]  ;;  %v2208_v19 = vld [vmem:[#allocation5 + $0x208] sm:$0xf] }
  0x4f   :  { %876 = vmatpush.bf16.msrb.mxu0 %v1977_v55  ;;  %v2073_v55 = vor.u32 %v2866_v48, %v2070_v49  ;;  %v2904_v21 = vld [vmem:[#allocation5 + $0x220] sm:$0xf0]  ;;  %v1986_v23 = vld [vmem:[#allocation5 + $0x64] sm:$0xf0]  ;;  %v2901_v24 = vld [vmem:[#allocation5 + $0x20c] sm:$0xf] }
  0x50   :  { %890 = vmatpush.bf16.msrb.mxu1 %v2201_v59  ;;  %v2264_v59 = vld [vmem:[#allocation5 + $0x278] sm:$0xf]  ;;  %v2210_v25 = vld [vmem:[#allocation5 + $0x224] sm:$0xf0]  ;;  %v1956_v27 = vld [vmem:[#allocation5 + $0x10] sm:$0xf] }
  0x51   :  { %904 = vmatpush.bf16.msrb.mxu2 %v1981_v60  ;;  %v2297_v60 = vor.u32 %v2922_v50, %v2294_v51  ;;  %v2265_v3 = vor.u32 %v2918_v61, %v2264_v59  ;;  %v2180_v31 = vld [vmem:[#allocation5 + $0x1d0] sm:$0xf]  ;;  %v2897_v32 = vld [vmem:[#allocation5 + $0x1e8] sm:$0xf0]  ;;  %v2213_v33 = vor.u32 %v2901_v24, %v2210_v25  ;;  %v2894_v36 = vld [vmem:[#allocation5 + $0x1d4] sm:$0xf] }
  0x52   :  { %918 = vmatpush.bf16.msrb.mxu3 %v2205_v0  ;;  %v2915_v0 = vld [vmem:[#allocation5 + $0x27c] sm:$0xf]  ;;  %v1958_v35 = vld [vmem:[#allocation5 + $0x2c] sm:$0xf0]  ;;  %v2160_v38 = vld [vmem:[#allocation5 + $0x1a0] sm:$0xf]  ;;  %v2181_v43 = vor.u32 %v2897_v32, %v2180_v31 }
  0x53   :  { %877 = vmatpush.bf16.msrb.mxu0 %v1949_v7  ;;  %v2236_v7 = vld [vmem:[#allocation5 + $0x240] sm:$0xf]  ;;  %v2269_v8 = vor.u32 %v2915_v0, %v2266_v1  ;;  %v2182_v37 = vld [vmem:[#allocation5 + $0x1ec] sm:$0xf0]  ;;  %v2891_v39 = vld [vmem:[#allocation5 + $0x1b8] sm:$0xf0] }
  0x54   :  { %891 = vmatpush.bf16.msrb.mxu1 %v2173_v11  ;;  %v2014_v11 = vld [vmem:[#allocation5 + $0x9c] sm:$0xf0]  ;;  %v2185_v45 = vor.u32 %v2894_v36, %v2182_v37  ;;  %v2132_v48 = vld [vmem:[#allocation5 + $0x168] sm:$0xf]  ;;  %v2884_v49 = vld [vmem:[#allocation5 + $0x180] sm:$0xf0] }
  0x55   :  { %905 = vmatpush.bf16.msrb.mxu2 %v1953_v12  ;;  %v2908_v12 = vld [vmem:[#allocation5 + $0x244] sm:$0xf]  ;;  %v2356_v50 = vld [vmem:[#allocation5 + $0x328] sm:$0xf]  ;;  %v2444_v56 = vld [vmem:[#allocation8 + $0x70] sm:$0xf] }
  0x56   :  { %919 = vmatpush.bf16.msrb.mxu3 %v2177_v15  ;;  %878 = vmatmul.bf16.vlgmr.msrb.gmra.mxu0 %v3252_v54  ;;  %v2237_v15 = vor.u32 %v2911_v9, %v2236_v7  ;;  %v2241_v20 = vor.u32 %v2908_v12, %v2238_v13  ;;  %v2940_v51 = vld [vmem:[#allocation5 + $0x340] sm:$0xf0]  ;;  %v2963_v58 = vld [vmem:[#allocation8 + $0x74] sm:$0xf0]  ;;  %v2436_v59 = vld [vmem:[#allocation8 + $0x60] sm:$0xf] }
  0x57   :  { %926 = vmatpush.bf16.msra.mxu0 %v2153_v16  ;;  %892 = vmatmul.bf16.vlgmr.msrb.gmra.mxu1 %v3254_v57  ;;  %v2017_v16 = vor.u32 %v2852_v10, %v2014_v11  ;;  %v2445_v61 = vor.u32 %v2963_v58, %v2444_v56  ;;  %v2961_v62 = vld [vmem:[#allocation8 + $0x64] sm:$0xf0]  ;;  %v2508_v63 = vld [vmem:[#allocation8 + $0xf0] sm:$0xf]  ;;  %v2979_v0 = vld [vmem:[#allocation8 + $0xf4] sm:$0xf0] }
  0x58   :  { %940 = vmatpush.bf16.msra.mxu1 %v2377_v17  ;;  %906 = vmatmul.bf16.vlgmr.msrb.gmra.mxu2 %v3252_v54  ;;  %v1984_v17 = vld [vmem:[#allocation5 + $0x48] sm:$0xf]  ;;  %v2328_v1 = vld [vmem:[#allocation5 + $0x2f0] sm:$0xf]  ;;  %v2428_v9 = vld [vmem:[#allocation8 + $0x50] sm:$0xf] }
  0x59   :  { %954 = vmatpush.bf16.msra.mxu2 %v2157_v18  ;;  %920 = vmatmul.bf16.vlgmr.msrb.gmra.mxu3 %v3254_v57  ;;  %v2848_v18 = vld [vmem:[#allocation5 + $0x60] sm:$0xf0]  ;;  %v2500_v5 = vld [vmem:[#allocation8 + $0xe0] sm:$0xf]  ;;  %v2977_v6 = vld [vmem:[#allocation8 + $0xe4] sm:$0xf0] }
  0x5a   :  { %968 = vmatpush.bf16.msra.mxu3 %v2381_v22  ;;  %v2845_v22 = vld [vmem:[#allocation5 + $0x4c] sm:$0xf]  ;;  %v1985_v26 = vor.u32 %v2848_v18, %v1984_v17  ;;  %v2959_v10 = vld [vmem:[#allocation8 + $0x54] sm:$0xf0]  ;;  %v2501_v11 = vor.u32 %v2977_v6, %v2500_v5  ;;  %v2870_v13 = vld [vmem:[#allocation5 + $0x110] sm:$0xf0] }
  0x5b   :  { %927 = vmatpush.bf16.msra.mxu0 %v2125_v28  ;;  %v2209_v28 = vor.u32 %v2904_v21, %v2208_v19  ;;  %v2926_v17 = vld [vmem:[#allocation5 + $0x2d0] sm:$0xf0]  ;;  %v2429_v18 = vor.u32 %v2959_v10, %v2428_v9  ;;  %v2420_v21 = vld [vmem:[#allocation8 + $0x40] sm:$0xf]  ;;  %v2863_v25 = vld [vmem:[#allocation5 + $0xd8] sm:$0xf0] }
  0x5c   :  { %941 = vmatpush.bf16.msra.mxu1 %v2349_v29  ;;  %v1989_v29 = vor.u32 %v2845_v22, %v1986_v23  ;;  %v2957_v22 = vld [vmem:[#allocation8 + $0x44] sm:$0xf0]  ;;  %v2412_v32 = vld [vmem:[#allocation8 + $0x30] sm:$0xf]  ;;  %v2020_v36 = vld [vmem:[#allocation5 + $0x88] sm:$0xf] }
  0x5d   :  { %955 = vmatpush.bf16.msra.mxu2 %v2129_v30  ;;  %v2841_v30 = vld [vmem:[#allocation5 + $0x28] sm:$0xf0]  ;;  %v2856_v37 = vld [vmem:[#allocation5 + $0xa0] sm:$0xf0]  ;;  %v2898_v56 = vld [vmem:[#allocation5 + $0x1f0] sm:$0xf0] }
  0x5e   :  { %969 = vmatpush.bf16.msra.mxu3 %v2353_v34  ;;  %v2838_v34 = vld [vmem:[#allocation5 + $0x14] sm:$0xf]  ;;  %v2636_v58 = vld [vmem:[#allocation8 + $0x1f0] sm:$0xf]  ;;  %v2612_v5 = vld [vmem:[#allocation8 + $0x1c0] sm:$0xf] }
  0x5f   :  { %928 = vmatpush.bf16.msra.mxu0 %v2097_v40  ;;  %v1957_v40 = vor.u32 %v2841_v30, %v1956_v27  ;;  %v1961_v44 = vor.u32 %v2838_v34, %v1958_v35  ;;  %v2973_v27 = vld [vmem:[#allocation8 + $0xc4] sm:$0xf0]  ;;  %v2421_v30 = vor.u32 %v2957_v22, %v2420_v21  ;;  %s1915_s18 = sshll.u32 %s3310_s5, 4  ;;  %s3208_s19 = smov 256   ;;  %s1916_s18 = int_to_ptr.hbm [resolvable:$true] %s1915_s18 }
  0x60   :  { %942 = vmatpush.bf16.msra.mxu1 %v2321_v41  ;;  %v2384_v41 = vld [vmem:[#allocation5 + $0x360] sm:$0xf]  ;;  %v3005_v6 = vld [vmem:[#allocation8 + $0x1c4] sm:$0xf0]  ;;  %s3209_s20 = smov 16  }
  0x61   :  { %956 = vmatpush.bf16.msra.mxu2 %v2101_v42  ;;  %v2947_v42 = vld [vmem:[#allocation5 + $0x378] sm:$0xf0]  ;;  %v2613_v9 = vor.u32 %v3005_v6, %v2612_v5  ;;  %v3001_v21 = vld [vmem:[#allocation8 + $0x1a4] sm:$0xf0] }
  0x62   :  { %970 = vmatpush.bf16.msra.mxu3 %v2325_v46  ;;  %v2161_v46 = vor.u32 %v2891_v39, %v2160_v38  ;;  %v2385_v47 = vor.u32 %v2947_v42, %v2384_v41  ;;  %v2244_v38 = vld [vmem:[#allocation5 + $0x248] sm:$0xf]  ;;  %v2912_v39 = vld [vmem:[#allocation5 + $0x260] sm:$0xf0]  ;;  %v2021_v41 = vor.u32 %v2856_v37, %v2020_v36  ;;  %v2999_v37 = vld [vmem:[#allocation8 + $0x194] sm:$0xf0] }
  0x63   :  { %929 = vmatpush.bf16.msra.mxu0 %v2069_v52  ;;  %v2104_v52 = vld [vmem:[#allocation5 + $0x130] sm:$0xf]  ;;  %v2404_v42 = vld [vmem:[#allocation8 + $0x20] sm:$0xf] }
  0x64   :  { %943 = vmatpush.bf16.msra.mxu1 %v2293_v53  ;;  %v2877_v53 = vld [vmem:[#allocation5 + $0x148] sm:$0xf0] }
  0x65   :  { %957 = vmatpush.bf16.msra.mxu2 %v2073_v55  ;;  %v2133_v55 = vor.u32 %v2884_v49, %v2132_v48  ;;  %v2105_v7 = vor.u32 %v2877_v53, %v2104_v52  ;;  %v2905_v48 = vld [vmem:[#allocation5 + $0x228] sm:$0xf0]  ;;  %v1964_v52 = vld [vmem:[#allocation5 + $0x18] sm:$0xf]  ;;  %v2842_v53 = vld [vmem:[#allocation5 + $0x30] sm:$0xf0] }
  0x66   :  { %971 = vmatpush.bf16.msra.mxu3 %v2297_v60  ;;  %v2357_v60 = vor.u32 %v2940_v51, %v2356_v50 }
  0x67   :  { %930 = vmatpush.bf16.msra.mxu0 %v2041_v2  ;;  %v2933_v2 = vld [vmem:[#allocation5 + $0x308] sm:$0xf0] }
  0x68   :  { %944 = vmatpush.bf16.msra.mxu1 %v2265_v3  ;;  %v2509_v3 = vor.u32 %v2979_v0, %v2508_v63  ;;  %v2329_v12 = vor.u32 %v2933_v2, %v2328_v1  ;;  %v2628_v63 = vld [vmem:[#allocation8 + $0x1e0] sm:$0xf]  ;;  %v3009_v0 = vld [vmem:[#allocation8 + $0x1e4] sm:$0xf0]  ;;  %v2620_v2 = vld [vmem:[#allocation8 + $0x1d0] sm:$0xf] }
  0x69   :  { %958 = vmatpush.bf16.msra.mxu2 %v2045_v4  ;;  %v2437_v4 = vor.u32 %v2961_v62, %v2436_v59  ;;  %v3011_v59 = vld [vmem:[#allocation8 + $0x1f4] sm:$0xf0]  ;;  %v2629_v1 = vor.u32 %v3009_v0, %v2628_v63  ;;  %v2989_v63 = vld [vmem:[#allocation8 + $0x144] sm:$0xf0]  ;;  %v2756_v0 = vld [vmem:[#allocation8 + $0x2e0] sm:$0xf] }
  0x6a   :  { %972 = vmatpush.bf16.msra.mxu3 %v2269_v8  ;;  %v2076_v8 = vld [vmem:[#allocation5 + $0xf8] sm:$0xf]  ;;  %v2637_v62 = vor.u32 %v3011_v59, %v2636_v58  ;;  %v3023_v59 = vld [vmem:[#allocation8 + $0x254] sm:$0xf0] }
  0x6b   :  { %931 = vmatpush.bf16.msra.mxu0 %v2013_v14  ;;  %v2492_v14 = vld [vmem:[#allocation8 + $0xd0] sm:$0xf]  ;;  %v2077_v19 = vor.u32 %v2870_v13, %v2076_v8  ;;  %v2971_v8 = vld [vmem:[#allocation8 + $0xb4] sm:$0xf0] }
  0x6c   :  { %945 = vmatpush.bf16.msra.mxu1 %v2237_v15  ;;  %v2975_v15 = vld [vmem:[#allocation8 + $0xd4] sm:$0xf0]  ;;  %v2684_v58 = vld [vmem:[#allocation8 + $0x250] sm:$0xf] }
  0x6d   :  { %959 = vmatpush.bf16.msra.mxu2 %v2017_v16  ;;  %v2300_v16 = vld [vmem:[#allocation5 + $0x2b8] sm:$0xf]  ;;  %v2493_v23 = vor.u32 %v2975_v15, %v2492_v14 }
  0x6e   :  { %973 = vmatpush.bf16.msra.mxu3 %v2241_v20  ;;  %v2048_v20 = vld [vmem:[#allocation5 + $0xc0] sm:$0xf]  ;;  %v2301_v24 = vor.u32 %v2926_v17, %v2300_v16  ;;  %v2396_v14 = vld [vmem:[#allocation8 + $0x10] sm:$0xf]  ;;  %v2969_v16 = vld [vmem:[#allocation8 + $0xa4] sm:$0xf0] }
  0x6f   :  { %932 = vmatpush.bf16.msra.mxu0 %v1985_v26  ;;  %v2484_v26 = vld [vmem:[#allocation8 + $0xc0] sm:$0xf]  ;;  %v2049_v31 = vor.u32 %v2863_v25, %v2048_v20  ;;  %v2572_v17 = vld [vmem:[#allocation8 + $0x170] sm:$0xf]  ;;  %v2949_v25 = vld [vmem:[#allocation8 + $0x4] sm:$0xf0] }
  0x70   :  { %946 = vmatpush.bf16.msra.mxu1 %v2209_v28  ;;  %v2272_v28 = vld [vmem:[#allocation5 + $0x280] sm:$0xf]  ;;  %v2485_v34 = vor.u32 %v2973_v27, %v2484_v26  ;;  %v2596_v20 = vld [vmem:[#allocation8 + $0x1a0] sm:$0xf]  ;;  %v2700_v26 = vld [vmem:[#allocation8 + $0x270] sm:$0xf] }
  0x71   :  { %960 = vmatpush.bf16.msra.mxu2 %v1989_v29  ;;  %v2919_v29 = vld [vmem:[#allocation5 + $0x298] sm:$0xf0] }
  0x72   :  { %974 = vmatpush.bf16.msra.mxu3 %v2213_v33  ;;  %v2955_v33 = vld [vmem:[#allocation8 + $0x34] sm:$0xf0]  ;;  %v2273_v35 = vor.u32 %v2919_v29, %v2272_v28  ;;  %v2460_v29 = vld [vmem:[#allocation8 + $0x90] sm:$0xf] }
  0x73   :  { %933 = vmatpush.bf16.msra.mxu0 %v1957_v40  ;;  %v2413_v40 = vor.u32 %v2955_v33, %v2412_v32  ;;  %v3027_v28 = vld [vmem:[#allocation8 + $0x274] sm:$0xf0]  ;;  %v2564_v33 = vld [vmem:[#allocation8 + $0x160] sm:$0xf] }
  0x74   :  { %947 = vmatpush.bf16.msra.mxu1 %v2181_v43  ;;  %v2953_v43 = vld [vmem:[#allocation8 + $0x24] sm:$0xf0] }
  0x75   :  { %961 = vmatpush.bf16.msra.mxu2 %v1961_v44  ;;  %v2245_v44 = vor.u32 %v2912_v39, %v2244_v38  ;;  %v2405_v49 = vor.u32 %v2953_v43, %v2404_v42  ;;  %v2692_v38 = vld [vmem:[#allocation8 + $0x260] sm:$0xf]  ;;  %v3025_v39 = vld [vmem:[#allocation8 + $0x264] sm:$0xf0] }
  0x76   :  { %975 = vmatpush.bf16.msra.mxu3 %v2185_v45  ;;  %934 = vmatmul.bf16.vlgmr.msra.gmra.mxu0 %v3252_v54  ;;  %v1992_v45 = vld [vmem:[#allocation5 + $0x50] sm:$0xf]  ;;  %v2452_v42 = vld [vmem:[#allocation8 + $0x80] sm:$0xf] }
  0x77   :  { %982 = vmatpush.bf16.msrb.mxu0 %v2161_v46  ;;  %948 = vmatmul.bf16.vlgmr.msra.gmra.mxu1 %v3254_v57  ;;  %v2849_v46 = vld [vmem:[#allocation5 + $0x68] sm:$0xf0]  ;;  %v2965_v43 = vld [vmem:[#allocation8 + $0x84] sm:$0xf0] }
  0x78   :  { %996 = vmatpush.bf16.msrb.mxu1 %v2385_v47  ;;  %962 = vmatmul.bf16.vlgmr.msra.gmra.mxu2 %v3252_v54  ;;  %v2216_v47 = vld [vmem:[#allocation5 + $0x210] sm:$0xf]  ;;  %v1993_v50 = vor.u32 %v2849_v46, %v1992_v45  ;;  %v2453_v45 = vor.u32 %v2965_v43, %v2452_v42  ;;  %v2991_v46 = vld [vmem:[#allocation8 + $0x154] sm:$0xf0] }
  0x79   :  { %976 = vmatmul.bf16.vlgmr.msra.gmra.mxu3 %v3254_v57  ;;  %1709 = vmatpush.bf16.msrb.mxu2 %v2445_v61  ;;  %v2217_v51 = vor.u32 %v2905_v48, %v2216_v47  ;;  %v2580_v47 = vld [vmem:[#allocation8 + $0x180] sm:$0xf]  ;;  %v2997_v48 = vld [vmem:[#allocation8 + $0x184] sm:$0xf0]  ;;  %v2983_v42 = vld [vmem:[#allocation8 + $0x114] sm:$0xf0] }
  0x7a   :  { %1723 = vmatpush.bf16.msrb.mxu3 %v2509_v3  ;;  %v3007_v3 = vld [vmem:[#allocation8 + $0x1d4] sm:$0xf0] }
  0x7b   :  { %983 = vmatpush.bf16.msrb.mxu0 %v2133_v55  ;;  %v2188_v55 = vld [vmem:[#allocation5 + $0x1d8] sm:$0xf] }
  0x7c   :  { %997 = vmatpush.bf16.msrb.mxu1 %v2357_v60  ;;  %v1965_v60 = vor.u32 %v2842_v53, %v1964_v52  ;;  %v2189_v61 = vor.u32 %v2898_v56, %v2188_v55  ;;  %v3043_v52 = vld [vmem:[#allocation8 + $0x2f4] sm:$0xf0]  ;;  %v2962_v53 = vld [vmem:[#allocation8 + $0x74] sm:$0xf]  ;;  %v2446_v56 = vld [vmem:[#allocation8 + $0x78] sm:$0xf0] }
  0x7d   :  { %1710 = vmatpush.bf16.msrb.mxu2 %v2437_v4  ;;  %v2621_v4 = vor.u32 %v3007_v3, %v2620_v2  ;;  %v3041_v2 = vld [vmem:[#allocation8 + $0x2e4] sm:$0xf0]  ;;  %v2960_v3 = vld [vmem:[#allocation8 + $0x64] sm:$0xf] }
  0x7e   :  { %1724 = vmatpush.bf16.msrb.mxu3 %v2501_v11  ;;  %v2604_v11 = vld [vmem:[#allocation8 + $0x1b0] sm:$0xf]  ;;  %v2757_v5 = vor.u32 %v3041_v2, %v2756_v0  ;;  %v2724_v0 = vld [vmem:[#allocation8 + $0x2a0] sm:$0xf]  ;;  %v2952_v2 = vld [vmem:[#allocation8 + $0x24] sm:$0xf] }
  0x7f   :  { %984 = vmatpush.bf16.msrb.mxu0 %v2105_v7  ;;  %v2476_v7 = vld [vmem:[#allocation8 + $0xb0] sm:$0xf] }
  0x80   :  { %998 = vmatpush.bf16.msrb.mxu1 %v2329_v12  ;;  %v2477_v10 = vor.u32 %v2971_v8, %v2476_v7  ;;  %v3003_v12 = vld [vmem:[#allocation8 + $0x1b4] sm:$0xf0]  ;;  %v2676_v8 = vld [vmem:[#allocation8 + $0x240] sm:$0xf] }
  0x81   :  { %1711 = vmatpush.bf16.msrb.mxu2 %v2429_v18  ;;  %v2605_v13 = vor.u32 %v3003_v12, %v2604_v11  ;;  %v3270_v7 = vld [vmem:[#allocation7] sm:$0xff]  ;;  %v2540_v12 = vld [vmem:[#allocation8 + $0x130] sm:$0xf] }
  0x82   :  { %1725 = vmatpush.bf16.msrb.mxu3 %v2493_v23  ;;  %v2597_v23 = vor.u32 %v3001_v21, %v2596_v20  ;;  %v2668_v21 = vld [vmem:[#allocation8 + $0x230] sm:$0xf] }
  0x83   :  { %985 = vmatpush.bf16.msrb.mxu0 %v2077_v19  ;;  %v2995_v19 = vld [vmem:[#allocation8 + $0x174] sm:$0xf0] }
  0x84   :  { %999 = vmatpush.bf16.msrb.mxu1 %v2301_v24  ;;  %v2573_v22 = vor.u32 %v2995_v19, %v2572_v17  ;;  %v2388_v24 = vld [vmem:[#allocation8] sm:$0xf] }
  0x85   :  { %1712 = vmatpush.bf16.msrb.mxu2 %v2421_v30  ;;  %v2389_v27 = vor.u32 %v2949_v25, %v2388_v24  ;;  %v2967_v30 = vld [vmem:[#allocation8 + $0x94] sm:$0xf0]  ;;  %v2532_v25 = vld [vmem:[#allocation8 + $0x120] sm:$0xf] }
  0x86   :  { %1726 = vmatpush.bf16.msrb.mxu3 %v2485_v34  ;;  %v2461_v32 = vor.u32 %v2967_v30, %v2460_v29  ;;  %v2993_v34 = vld [vmem:[#allocation8 + $0x164] sm:$0xf0]  ;;  %v2956_v30 = vld [vmem:[#allocation8 + $0x44] sm:$0xf] }
  0x87   :  { %986 = vmatpush.bf16.msrb.mxu0 %v2049_v31  ;;  %v2701_v31 = vor.u32 %v3027_v28, %v2700_v26  ;;  %v2565_v36 = vor.u32 %v2993_v34, %v2564_v33  ;;  %v2985_v26 = vld [vmem:[#allocation8 + $0x124] sm:$0xf0]  ;;  %v2740_v28 = vld [vmem:[#allocation8 + $0x2c0] sm:$0xf]  ;;  %v2422_v33 = vld [vmem:[#allocation8 + $0x48] sm:$0xf0] }
  0x88   :  { %1000 = vmatpush.bf16.msrb.mxu1 %v2273_v35  ;;  %v2588_v35 = vld [vmem:[#allocation8 + $0x190] sm:$0xf]  ;;  %v3037_v29 = vld [vmem:[#allocation8 + $0x2c4] sm:$0xf0] }
  0x89   :  { %1713 = vmatpush.bf16.msrb.mxu2 %v2413_v40  ;;  %v2589_v40 = vor.u32 %v2999_v37, %v2588_v35  ;;  %v2425_v35 = vor.u32 %v2956_v30, %v2422_v33  ;;  %v3017_v37 = vld [vmem:[#allocation8 + $0x224] sm:$0xf0] }
  0x8a   :  { %1727 = vmatpush.bf16.msrb.mxu3 %v2477_v10  ;;  %v214_v10 = vperm.slane %v3270_v7, 0  ;;  %v3029_v30 = vld [vmem:[#allocation8 + $0x284] sm:$0xf0] }
  0x8b   :  { %987 = vmatpush.bf16.msrb.mxu0 %v2021_v41  ;;  %v2693_v41 = vor.u32 %v3025_v39, %v2692_v38 }
  0x8c   :  { %1001 = vmatpush.bf16.msrb.mxu1 %v2245_v44  ;;  %v2556_v44 = vld [vmem:[#allocation8 + $0x150] sm:$0xf] }
  0x8d   :  { %1714 = vmatpush.bf16.msrb.mxu2 %v2405_v49  ;;  %v2557_v49 = vor.u32 %v2991_v46, %v2556_v44  ;;  %v2732_v44 = vld [vmem:[#allocation8 + $0x2b0] sm:$0xf]  ;;  %v2954_v46 = vld [vmem:[#allocation8 + $0x34] sm:$0xf] }
  0x8f   :  { %988 = vmatpush.bf16.msrb.mxu0 %v1993_v50  ;;  %v2581_v50 = vor.u32 %v2997_v48, %v2580_v47 }
  0x90   :  { %1002 = vmatpush.bf16.msrb.mxu1 %v2217_v51  ;;  %v2764_v51 = vld [vmem:[#allocation8 + $0x2f0] sm:$0xf] }
  0x91   :  { %v2765_v55 = vor.u32 %v3043_v52, %v2764_v51 }
  0x93   :  { %989 = vmatpush.bf16.msrb.mxu0 %v1965_v60  ;;  %v2449_v60 = vor.u32 %v2962_v53, %v2446_v56  ;;  %v3015_v56 = vld [vmem:[#allocation8 + $0x214] sm:$0xf0] }
  0x94   :  { %1003 = vmatpush.bf16.msrb.mxu1 %v2189_v61  ;;  %v2685_v61 = vor.u32 %v3023_v59, %v2684_v58 }
  0x96   :  { %990 = vmatmul.bf16.vlgmr.msrb.gmra.mxu0 %v3252_v54  ;;  %v2951_v54 = vld [vmem:[#allocation8 + $0x14] sm:$0xf0] }
  0x97   :  { %1004 = vmatmul.bf16.vlgmr.msrb.gmra.mxu1 %v3254_v57  ;;  %v2397_v15 = vor.u32 %v2951_v54, %v2396_v14  ;;  %v2468_v57 = vld [vmem:[#allocation8 + $0xa0] sm:$0xf]  ;;  %1737 = vmatpush.bf16.msra.mxu0 %v2573_v22  ;;  %v2748_v54 = vld [vmem:[#allocation8 + $0x2d0] sm:$0xf]  ;;  %v3019_v22 = vld [vmem:[#allocation8 + $0x234] sm:$0xf0] }
  0x98   :  { %1751 = vmatpush.bf16.msra.mxu1 %v2637_v62  ;;  %v2469_v18 = vor.u32 %v2969_v16, %v2468_v57  ;;  %v2548_v62 = vld [vmem:[#allocation8 + $0x140] sm:$0xf]  ;;  %v2958_v57 = vld [vmem:[#allocation8 + $0x54] sm:$0xf]  ;;  %v2669_v24 = vor.u32 %v3019_v22, %v2668_v21 }
  0x99   :  { %1715 = vmatpush.bf16.msrb.mxu2 %v2397_v15  ;;  %v3039_v15 = vld [vmem:[#allocation8 + $0x2d4] sm:$0xf0] }
  0x9a   :  { %1728 = vmatpush.bf16.msrb.mxu3 %v2469_v18  ;;  %v2749_v17 = vor.u32 %v3039_v15, %v2748_v54  ;;  %v2430_v18 = vld [vmem:[#allocation8 + $0x58] sm:$0xf0]  ;;  %v2978_v54 = vld [vmem:[#allocation8 + $0xf4] sm:$0xf] }
  0x9b   :  { %1738 = vmatpush.bf16.msra.mxu0 %v2565_v36  ;;  %v2433_v20 = vor.u32 %v2958_v57, %v2430_v18  ;;  %v2660_v36 = vld [vmem:[#allocation8 + $0x220] sm:$0xf]  ;;  %v2510_v15 = vld [vmem:[#allocation8 + $0xf8] sm:$0xf0]  ;;  %v3031_v18 = vld [vmem:[#allocation8 + $0x294] sm:$0xf0] }
  0x9c   :  { %1752 = vmatpush.bf16.msra.mxu1 %v2629_v1  ;;  %v2549_v1 = vor.u32 %v2989_v63, %v2548_v62 }
  0x9d   :  { %1716 = vmatpush.bf16.msrb.mxu2 %v2389_v27  ;;  %v2533_v27 = vor.u32 %v2985_v26, %v2532_v25  ;;  %v2976_v26 = vld [vmem:[#allocation8 + $0xe4] sm:$0xf] }
  0x9e   :  { %1729 = vmatpush.bf16.msrb.mxu3 %v2461_v32  ;;  %v2741_v32 = vor.u32 %v3037_v29, %v2740_v28  ;;  %v2708_v29 = vld [vmem:[#allocation8 + $0x280] sm:$0xf] }
  0x9f   :  { %1739 = vmatpush.bf16.msra.mxu0 %v2557_v49  ;;  %v2709_v33 = vor.u32 %v3029_v30, %v2708_v29  ;;  %v2984_v30 = vld [vmem:[#allocation8 + $0x124] sm:$0xf] }
  0xa0   :  { %1753 = vmatpush.bf16.msra.mxu1 %v2621_v4  ;;  %v2438_v4 = vld [vmem:[#allocation8 + $0x68] sm:$0xf0] }
  0xa1   :  { %1765 = vmatpush.bf16.msra.mxu2 %v2701_v31  ;;  %v2441_v6 = vor.u32 %v2960_v3, %v2438_v4  ;;  %v215_v31 = vperm.slane %v3270_v7, 1 }
  0xa2   :  { %1730 = vmatpush.bf16.msrb.mxu3 %v2453_v45  ;;  %v3035_v45 = vld [vmem:[#allocation8 + $0x2b4] sm:$0xf0] }
  0xa3   :  { %1740 = vmatpush.bf16.msra.mxu0 %v2549_v1  ;;  %v2733_v49 = vor.u32 %v3035_v45, %v2732_v44  ;;  %v3033_v1 = vld [vmem:[#allocation8 + $0x2a4] sm:$0xf0]  ;;  %v2972_v45 = vld [vmem:[#allocation8 + $0xc4] sm:$0xf] }
  0xa4   :  { %1754 = vmatpush.bf16.msra.mxu1 %v2613_v9  ;;  %v3021_v9 = vld [vmem:[#allocation8 + $0x244] sm:$0xf0]  ;;  %v2725_v4 = vor.u32 %v3033_v1, %v2724_v0 }
  0xa5   :  { %1766 = vmatpush.bf16.msra.mxu2 %v2693_v41  ;;  %v2677_v11 = vor.u32 %v3021_v9, %v2676_v8  ;;  %v2524_v41 = vld [vmem:[#allocation8 + $0x110] sm:$0xf] }
  0xa6   :  { %1779 = vmatpush.bf16.msra.mxu3 %v2765_v55  ;;  %v2525_v43 = vor.u32 %v2983_v42, %v2524_v41  ;;  %v2652_v55 = vld [vmem:[#allocation8 + $0x210] sm:$0xf]  ;;  %v2992_v41 = vld [vmem:[#allocation8 + $0x164] sm:$0xf] }
  0xa7   :  { %v2653_v59 = vor.u32 %v3015_v56, %v2652_v55 }
  0xa8   :  { %1755 = vmatpush.bf16.msra.mxu1 %v2605_v13  ;;  %v2987_v13 = vld [vmem:[#allocation8 + $0x134] sm:$0xf0] }
  0xa9   :  { %1767 = vmatpush.bf16.msra.mxu2 %v2685_v61  ;;  %v2541_v14 = vor.u32 %v2987_v13, %v2540_v12  ;;  %v2981_v61 = vld [vmem:[#allocation8 + $0x104] sm:$0xf0] }
  0xaa   :  { %1780 = vmatpush.bf16.msra.mxu3 %v2757_v5  ;;  %v2406_v5 = vld [vmem:[#allocation8 + $0x28] sm:$0xf0] }
  0xab   :  { %1741 = vmatpush.bf16.msra.mxu0 %v2541_v14  ;;  %v2409_v9 = vor.u32 %v2952_v2, %v2406_v5  ;;  %v2988_v2 = vld [vmem:[#allocation8 + $0x144] sm:$0xf] }
  0xac   :  { %1756 = vmatpush.bf16.msra.mxu1 %v2597_v23  ;;  %v2968_v5 = vld [vmem:[#allocation8 + $0xa4] sm:$0xf] }
  0xad   :  { %1768 = vmatpush.bf16.msra.mxu2 %v2677_v11  ;;  %v3013_v11 = vld [vmem:[#allocation8 + $0x204] sm:$0xf0] }
  0xae   :  { %1781 = vmatpush.bf16.msra.mxu3 %v2749_v17  ;;  %v2716_v17 = vld [vmem:[#allocation8 + $0x290] sm:$0xf] }
  0xaf   :  { %1742 = vmatpush.bf16.msra.mxu0 %v2533_v27  ;;  %v2717_v22 = vor.u32 %v3031_v18, %v2716_v17  ;;  %v2502_v27 = vld [vmem:[#allocation8 + $0xe8] sm:$0xf0] }
  0xb0   :  { %1757 = vmatpush.bf16.msra.mxu1 %v2589_v40  ;;  %v2661_v40 = vor.u32 %v3017_v37, %v2660_v36  ;;  %v2505_v28 = vor.u32 %v2976_v26, %v2502_v27  ;;  %v2574_v36 = vld [vmem:[#allocation8 + $0x178] sm:$0xf0]  ;;  %v3053_v26 = vld [vmem:[#allocation8 + $0x344] sm:$0xf0] }
  0xb1   :  { %1769 = vmatpush.bf16.msra.mxu2 %v2669_v24 }
  0xb2   :  { %1782 = vmatpush.bf16.msra.mxu3 %v2741_v32 }
  0xb3   :  { %v823_v16 = vpop.f32.mrf.mxu0  ;;  %1743 = vmatpush.bf16.msra.mxu0 %v2525_v43  ;;  %v2566_v43 = vld [vmem:[#allocation8 + $0x168] sm:$0xf0] }
  0xb4   :  { %1758 = vmatpush.bf16.msra.mxu1 %v2581_v50  ;;  %v837_v19 = vpop.f32.mrf.mxu1  ;;  %v824_v23 = vadd.f32 %v823_v16, %v214_v10  ;;  %v2414_v50 = vld [vmem:[#allocation8 + $0x38] sm:$0xf0]  ;;  %v2513_v16 = vor.u32 %v2978_v54, %v2510_v15  ;;  %v2569_v44 = vor.u32 %v2992_v41, %v2566_v43  ;;  %v2986_v54 = vld [vmem:[#allocation8 + $0x134] sm:$0xf] }
  0xb5   :  { %1770 = vmatpush.bf16.msra.mxu2 %v2661_v40  ;;  %v2417_v53 = vor.u32 %v2954_v46, %v2414_v50  ;;  %v2494_v40 = vld [vmem:[#allocation8 + $0xd8] sm:$0xf0]  ;;  %v2486_v46 = vld [vmem:[#allocation8 + $0xc8] sm:$0xf0]  ;;  %v216_v50 = vperm.slane %v3270_v7, 2 }
  0xb6   :  { %v838_v38 = vadd.f32 %v837_v19, %v824_v23  ;;  %1783 = vmatpush.bf16.msra.mxu3 %v2733_v49  ;;  %v2950_v19 = vld [vmem:[#allocation8 + $0x14] sm:$0xf]  ;;  %v2398_v23 = vld [vmem:[#allocation8 + $0x18] sm:$0xf0]  ;;  %v3059_v49 = vld [vmem:[#allocation8 + $0x374] sm:$0xf0] }
  0xb7   :  { %v2401_v24 = vor.u32 %v2950_v19, %v2398_v23  ;;  %v2542_v15 = vld [vmem:[#allocation8 + $0x138] sm:$0xf0] }
  0xb8   :  { %1807 = vmatpush.bf16.msrb.mxu1 %v2449_v60  ;;  %v1010_v58 = vmax.f32 %v838_v38, 0.0  ;;  %v2516_v60 = vld [vmem:[#allocation8 + $0x100] sm:$0xf]  ;;  %v2545_v18 = vor.u32 %v2986_v54, %v2542_v15 }
  0xb9   :  { %v2517_v63 = vor.u32 %v2981_v61, %v2516_v60  ;;  %1771 = vmatpush.bf16.msra.mxu2 %v2653_v59  ;;  %v2970_v59 = vld [vmem:[#allocation8 + $0xb4] sm:$0xf]  ;;  %v2478_v60 = vld [vmem:[#allocation8 + $0xb8] sm:$0xf0] }
  0xba   :  { %1784 = vmatpush.bf16.msra.mxu3 %v2725_v4  ;;  %v2481_v61 = vor.u32 %v2970_v59, %v2478_v60  ;;  %v2518_v59 = vld [vmem:[#allocation8 + $0x108] sm:$0xf0] }
  0xbb   :  { %v851_v34 = vpop.f32.mrf.mxu2  ;;  %v825_v48 = vpop.f32.mrf.mxu0  ;;  %1744 = vmatpush.bf16.msra.mxu0 %v2517_v63  ;;  %v3057_v63 = vld [vmem:[#allocation8 + $0x364] sm:$0xf0] }
  0xbc   :  { %1808 = vmatpush.bf16.msrb.mxu1 %v2441_v6  ;;  %v865_v39 = vpop.f32.mrf.mxu3  ;;  %v852_v47 = vadd.f32 %v851_v34, %v215_v31  ;;  %v826_v51 = vadd.f32 %v825_v48, %v214_v10  ;;  %v839_v52 = vpop.f32.mrf.mxu1  ;;  %v2644_v10 = vld [vmem:[#allocation8 + $0x200] sm:$0xf]  ;;  %v2390_v34 = vld [vmem:[#allocation8 + $0x8] sm:$0xf0]  ;;  %v2828_v48 = vld [vmem:[#allocation8 + $0x370] sm:$0xf] }
  0xbd   :  { %v2645_v14 = vor.u32 %v3013_v11, %v2644_v10  ;;  %v2812_v10 = vld [vmem:[#allocation8 + $0x350] sm:$0xf]  ;;  %v3055_v11 = vld [vmem:[#allocation8 + $0x354] sm:$0xf0] }
  0xbe   :  { %v840_v62 = vadd.f32 %v839_v52, %v826_v51  ;;  %v866_v3 = vadd.f32 %v865_v39, %v852_v47  ;;  %1785 = vmatpush.bf16.msra.mxu3 %v2717_v22  ;;  %v2974_v39 = vld [vmem:[#allocation8 + $0xd4] sm:$0xf]  ;;  %v2489_v47 = vor.u32 %v2972_v45, %v2486_v46  ;;  %v2829_v51 = vor.u32 %v3059_v49, %v2828_v48  ;;  %v2462_v22 = vld [vmem:[#allocation8 + $0x98] sm:$0xf0] }
  0xbf   :  { %1772 = vmatpush.bf16.msra.mxu2 %v2645_v14  ;;  %v2497_v42 = vor.u32 %v2974_v39, %v2494_v40  ;;  %v2990_v52 = vld [vmem:[#allocation8 + $0x154] sm:$0xf]  ;;  %v2813_v14 = vor.u32 %v3055_v11, %v2812_v10  ;;  %v2796_v39 = vld [vmem:[#allocation8 + $0x330] sm:$0xf]  ;;  %v3051_v40 = vld [vmem:[#allocation8 + $0x334] sm:$0xf0] }
  0xc0   :  { %1809 = vmatpush.bf16.msrb.mxu1 %v2433_v20  ;;  %v1017_v6 = vmax.f32 %v840_v62, 0.0  ;;  %v1011_v20 = vmax.f32 %v866_v3, 0.0  ;;  %1793 = vmatpush.bf16.msrb.mxu0 %v2829_v51  ;;  %v2820_v62 = vld [vmem:[#allocation8 + $0x360] sm:$0xf]  ;;  %v2550_v3 = vld [vmem:[#allocation8 + $0x148] sm:$0xf0]  ;;  %v2797_v43 = vor.u32 %v3051_v40, %v2796_v39 }
  0xc1   :  { %v2821_v1 = vor.u32 %v3057_v63, %v2820_v62  ;;  %v2553_v4 = vor.u32 %v2988_v2, %v2550_v3  ;;  %v2526_v45 = vld [vmem:[#allocation8 + $0x118] sm:$0xf0]  ;;  %v3026_v49 = vld [vmem:[#allocation8 + $0x274] sm:$0xf]  ;;  %v3024_v63 = vld [vmem:[#allocation8 + $0x264] sm:$0xf] }
  0xc2   :  { %v3274_v57 = vpack.c.bf16 %v1017_v6, %v1010_v58  ;;  %1786 = vmatpush.bf16.msra.mxu3 %v2709_v33  ;;  %v2470_v6 = vld [vmem:[#allocation8 + $0xa8] sm:$0xf0]  ;;  %v2780_v2 = vld [vmem:[#allocation8 + $0x310] sm:$0xf]  ;;  %v3047_v3 = vld [vmem:[#allocation8 + $0x314] sm:$0xf0] }
  0xc3   :  { %v853_v8 = vpop.f32.mrf.mxu2  ;;  %v3045_v10 = vld [vmem:[#allocation8 + $0x304] sm:$0xf0]  ;;  %v3016_v39 = vld [vmem:[#allocation8 + $0x224] sm:$0xf]  ;;  %v2662_v40 = vld [vmem:[#allocation8 + $0x228] sm:$0xf0] }
  0xc4   :  { %1810 = vmatpush.bf16.msrb.mxu1 %v2425_v35  ;;  %v854_v12 = vadd.f32 %v853_v8, %v215_v31  ;;  %v867_v13 = vpop.f32.mrf.mxu3  ;;  %1717 = vmatmul.bf16.vlgmr.msrb.gmra.mxu2 %v3274_v57  ;;  %v2948_v31 = vld [vmem:[#allocation8 + $0x4] sm:$0xf]  ;;  %v2994_v35 = vld [vmem:[#allocation8 + $0x174] sm:$0xf]  ;;  %v217_v8 = vperm.slane %v3270_v7, 3 }
  0xc5   :  { %1821 = vmatpush.bf16.msrb.mxu2 %v2513_v16  ;;  %v2393_v37 = vor.u32 %v2948_v31, %v2390_v34  ;;  %v2577_v38 = vor.u32 %v2994_v35, %v2574_v36  ;;  %1794 = vmatpush.bf16.msrb.mxu0 %v2821_v1  ;;  %v2534_v31 = vld [vmem:[#allocation8 + $0x128] sm:$0xf0]  ;;  %v2964_v35 = vld [vmem:[#allocation8 + $0x84] sm:$0xf] }
  0xc6   :  { %v868_v21 = vadd.f32 %v867_v13, %v854_v12  ;;  %v2537_v33 = vor.u32 %v2984_v30, %v2534_v31  ;;  %v2454_v36 = vld [vmem:[#allocation8 + $0x88] sm:$0xf0] }
  0xc7   :  { %v2694_v1 = vld [vmem:[#allocation8 + $0x268] sm:$0xf0] }
  0xc8   :  { %1811 = vmatpush.bf16.msrb.mxu1 %v2417_v53  ;;  %v1018_v25 = vmax.f32 %v868_v21, 0.0  ;;  %v2558_v53 = vld [vmem:[#allocation8 + $0x158] sm:$0xf0]  ;;  %v2966_v21 = vld [vmem:[#allocation8 + $0x94] sm:$0xf] }
  0xc9   :  { %1822 = vmatpush.bf16.msrb.mxu2 %v2505_v28  ;;  %v2561_v56 = vor.u32 %v2990_v52, %v2558_v53  ;;  %1795 = vmatpush.bf16.msrb.mxu0 %v2813_v14  ;;  %v2788_v53 = vld [vmem:[#allocation8 + $0x320] sm:$0xf]  ;;  %v2638_v14 = vld [vmem:[#allocation8 + $0x1f8] sm:$0xf0] }
  0xca   :  { %v3277_v32 = vpack.c.bf16 %v1018_v25, %v1011_v20  ;;  %v2804_v25 = vld [vmem:[#allocation8 + $0x340] sm:$0xf] }
  0xcb   :  { %v2805_v29 = vor.u32 %v3053_v26, %v2804_v25  ;;  %v3018_v25 = vld [vmem:[#allocation8 + $0x234] sm:$0xf]  ;;  %v2670_v26 = vld [vmem:[#allocation8 + $0x238] sm:$0xf0] }
  0xcc   :  { %1812 = vmatpush.bf16.msrb.mxu1 %v2409_v9  ;;  %1731 = vmatmul.bf16.vlgmr.msrb.gmra.mxu3 %v3277_v32  ;;  %v2473_v9 = vor.u32 %v2968_v5, %v2470_v6  ;;  %v2697_v5 = vor.u32 %v3024_v63, %v2694_v1  ;;  %v3022_v6 = vld [vmem:[#allocation8 + $0x254] sm:$0xf]  ;;  %v2758_v63 = vld [vmem:[#allocation8 + $0x2e8] sm:$0xf0] }
  0xcd   :  { %1835 = vmatpush.bf16.msrb.mxu3 %v2577_v38  ;;  %1823 = vmatpush.bf16.msrb.mxu2 %v2497_v42  ;;  %v2457_v38 = vor.u32 %v2964_v35, %v2454_v36  ;;  %v2673_v36 = vor.u32 %v3018_v25, %v2670_v26  ;;  %v3036_v26 = vld [vmem:[#allocation8 + $0x2c4] sm:$0xf] }
  0xce   :  { %1796 = vmatpush.bf16.msrb.mxu0 %v2805_v29  ;;  %v2622_v29 = vld [vmem:[#allocation8 + $0x1d8] sm:$0xf0] }
  0xd0   :  { %1813 = vmatpush.bf16.msrb.mxu1 %v2401_v24  ;;  %v2465_v24 = vor.u32 %v2966_v21, %v2462_v22  ;;  %v2630_v21 = vld [vmem:[#allocation8 + $0x1e8] sm:$0xf0] }
  0xd1   :  { %1836 = vmatpush.bf16.msrb.mxu3 %v2569_v44  ;;  %1824 = vmatpush.bf16.msrb.mxu2 %v2489_v47  ;;  %v2982_v44 = vld [vmem:[#allocation8 + $0x114] sm:$0xf] }
  0xd2   :  { %v2529_v48 = vor.u32 %v2982_v44, %v2526_v45  ;;  %1797 = vmatpush.bf16.msrb.mxu0 %v2797_v43  ;;  %v3004_v43 = vld [vmem:[#allocation8 + $0x1c4] sm:$0xf]  ;;  %v2614_v44 = vld [vmem:[#allocation8 + $0x1c8] sm:$0xf0] }
  0xd3   :  { %v879_v55 = vpop.f32.mrf.mxu0 }
  0xd4   :  { %1814 = vmatpush.bf16.msrb.mxu1 %v2393_v37  ;;  %v893_v58 = vpop.f32.mrf.mxu1  ;;  %v880_v0 = vadd.f32 %v879_v55, %v216_v50  ;;  %v3049_v55 = vld [vmem:[#allocation8 + $0x324] sm:$0xf0] }
  0xd5   :  { %1837 = vmatpush.bf16.msrb.mxu3 %v2561_v56  ;;  %1825 = vmatpush.bf16.msrb.mxu2 %v2481_v61  ;;  %v2789_v56 = vor.u32 %v3049_v55, %v2788_v53  ;;  %v2654_v53 = vld [vmem:[#allocation8 + $0x218] sm:$0xf0] }
  0xd6   :  { %v894_v12 = vadd.f32 %v893_v58, %v880_v0  ;;  %v2980_v58 = vld [vmem:[#allocation8 + $0x104] sm:$0xf] }
  0xd7   :  { %v2521_v61 = vor.u32 %v2980_v58, %v2518_v59  ;;  %1798 = vmatpush.bf16.msrb.mxu0 %v2789_v56  ;;  %v3002_v58 = vld [vmem:[#allocation8 + $0x1b4] sm:$0xf]  ;;  %v2606_v59 = vld [vmem:[#allocation8 + $0x1b8] sm:$0xf0] }
  0xd8   :  { %v1012_v27 = vmax.f32 %v894_v12, 0.0  ;;  %v3010_v12 = vld [vmem:[#allocation8 + $0x1f4] sm:$0xf]  ;;  %v2609_v1 = vor.u32 %v3002_v58, %v2606_v59 }
  0xd9   :  { %1838 = vmatpush.bf16.msrb.mxu3 %v2553_v4  ;;  %1826 = vmatpush.bf16.msrb.mxu2 %v2473_v9  ;;  %v2781_v4 = vor.u32 %v3047_v3, %v2780_v2  ;;  %v2772_v9 = vld [vmem:[#allocation8 + $0x300] sm:$0xf] }
  0xda   :  { %v2773_v11 = vor.u32 %v3045_v10, %v2772_v9 }
  0xdb   :  { %v907_v13 = vpop.f32.mrf.mxu2  ;;  %v881_v16 = vpop.f32.mrf.mxu0  ;;  %1799 = vmatpush.bf16.msrb.mxu0 %v2781_v4  ;;  %v3012_v4 = vld [vmem:[#allocation8 + $0x204] sm:$0xf] }
  0xdc   :  { %v921_v17 = vpop.f32.mrf.mxu3  ;;  %v882_v19 = vadd.f32 %v881_v16, %v216_v50  ;;  %v895_v20 = vpop.f32.mrf.mxu1  ;;  %v908_v23 = vadd.f32 %v907_v13, %v217_v8  ;;  %v2702_v50 = vld [vmem:[#allocation8 + $0x278] sm:$0xf0]  ;;  %v218_v13 = vperm.slane %v3270_v7, 4  ;;  %v2641_v16 = vor.u32 %v3010_v12, %v2638_v14  ;;  %v3058_v12 = vld [vmem:[#allocation8 + $0x374] sm:$0xf] }
  0xdd   :  { %1839 = vmatpush.bf16.msrb.mxu3 %v2545_v18  ;;  %1827 = vmatpush.bf16.msrb.mxu2 %v2465_v24  ;;  %v2705_v62 = vor.u32 %v3026_v49, %v2702_v50  ;;  %v3020_v18 = vld [vmem:[#allocation8 + $0x244] sm:$0xf]  ;;  %v2617_v49 = vor.u32 %v3004_v43, %v2614_v44  ;;  %v2665_v50 = vor.u32 %v3016_v39, %v2662_v40  ;;  %v2806_v43 = vld [vmem:[#allocation8 + $0x348] sm:$0xf0]  ;;  %v220_v44 = vperm.slane %v3270_v7, 6 }
  0xde   :  { %v896_v28 = vadd.f32 %v895_v20, %v882_v19  ;;  %v922_v37 = vadd.f32 %v921_v17, %v908_v23  ;;  %v2678_v19 = vld [vmem:[#allocation8 + $0x248] sm:$0xf0]  ;;  %v3008_v20 = vld [vmem:[#allocation8 + $0x1e4] sm:$0xf] }
  0xdf   :  { %1800 = vmatpush.bf16.msrb.mxu0 %v2773_v11  ;;  %v2633_v23 = vor.u32 %v3008_v20, %v2630_v21  ;;  %v2681_v24 = vor.u32 %v3020_v18, %v2678_v19  ;;  %v2998_v19 = vld [vmem:[#allocation8 + $0x194] sm:$0xf]  ;;  %v2590_v20 = vld [vmem:[#allocation8 + $0x198] sm:$0xf0] }
  0xe0   :  { %v1019_v34 = vmax.f32 %v896_v28, 0.0  ;;  %v1013_v51 = vmax.f32 %v922_v37, 0.0  ;;  %v3006_v28 = vld [vmem:[#allocation8 + $0x1d4] sm:$0xf]  ;;  %v2593_v25 = vor.u32 %v2998_v19, %v2590_v20 }
  0xe1   :  { %1840 = vmatpush.bf16.msrb.mxu3 %v2537_v33  ;;  %1828 = vmatpush.bf16.msrb.mxu2 %v2457_v38  ;;  %v2625_v33 = vor.u32 %v3006_v28, %v2622_v29  ;;  %v2996_v28 = vld [vmem:[#allocation8 + $0x184] sm:$0xf]  ;;  %v2582_v29 = vld [vmem:[#allocation8 + $0x188] sm:$0xf0] }
  0xe2   :  { %v3282_v41 = vpack.c.bf16 %v1019_v34, %v1012_v27  ;;  %v219_v27 = vperm.slane %v3270_v7, 5  ;;  %v3048_v7 = vld [vmem:[#allocation8 + $0x324] sm:$0xf] }
  0xe3   :  { %v909_v42 = vpop.f32.mrf.mxu2 }
  0xe4   :  { %v910_v46 = vadd.f32 %v909_v42, %v217_v8  ;;  %v923_v47 = vpop.f32.mrf.mxu3  ;;  %1745 = vmatmul.bf16.vlgmr.msra.gmra.mxu0 %v3282_v41  ;;  %v2686_v8 = vld [vmem:[#allocation8 + $0x258] sm:$0xf0] }
  0xe5   :  { %1841 = vmatpush.bf16.msrb.mxu3 %v2529_v48  ;;  %v2689_v15 = vor.u32 %v3022_v6, %v2686_v8  ;;  %1849 = vmatpush.bf16.msra.mxu0 %v2641_v16  ;;  %v2766_v48 = vld [vmem:[#allocation8 + $0x2f8] sm:$0xf0]  ;;  %v3000_v6 = vld [vmem:[#allocation8 + $0x1a4] sm:$0xf]  ;;  %v2598_v8 = vld [vmem:[#allocation8 + $0x1a8] sm:$0xf0] }
  0xe6   :  { %v924_v52 = vadd.f32 %v923_v47, %v910_v46  ;;  %v3042_v47 = vld [vmem:[#allocation8 + $0x2f4] sm:$0xf]  ;;  %v2601_v14 = vor.u32 %v3000_v6, %v2598_v8 }
  0xe7   :  { %v2769_v56 = vor.u32 %v3042_v47, %v2766_v48  ;;  %v2726_v47 = vld [vmem:[#allocation8 + $0x2a8] sm:$0xf0] }
  0xe8   :  { %v1020_v60 = vmax.f32 %v924_v52, 0.0  ;;  %v3014_v52 = vld [vmem:[#allocation8 + $0x214] sm:$0xf] }
  0xe9   :  { %1842 = vmatpush.bf16.msrb.mxu3 %v2521_v61  ;;  %1850 = vmatpush.bf16.msra.mxu0 %v2633_v23  ;;  %v2657_v3 = vor.u32 %v3014_v52, %v2654_v53  ;;  %v3056_v23 = vld [vmem:[#allocation8 + $0x364] sm:$0xf]  ;;  %v3030_v53 = vld [vmem:[#allocation8 + $0x294] sm:$0xf] }
  0xea   :  { %v3285_v0 = vpack.c.bf16 %v1020_v60, %v1013_v51 }
  0xec   :  { %1759 = vmatmul.bf16.vlgmr.msra.gmra.mxu1 %v3285_v0 }
  0xed   :  { %1863 = vmatpush.bf16.msra.mxu1 %v2705_v62  ;;  %1851 = vmatpush.bf16.msra.mxu0 %v2625_v33  ;;  %v3040_v62 = vld [vmem:[#allocation8 + $0x2e4] sm:$0xf]  ;;  %v3054_v33 = vld [vmem:[#allocation8 + $0x354] sm:$0xf] }
  0xee   :  { %v2761_v11 = vor.u32 %v3040_v62, %v2758_v63  ;;  %v3028_v63 = vld [vmem:[#allocation8 + $0x284] sm:$0xf] }
  0xf1   :  { %1864 = vmatpush.bf16.msra.mxu1 %v2697_v5  ;;  %1852 = vmatpush.bf16.msra.mxu0 %v2617_v49  ;;  %v2646_v5 = vld [vmem:[#allocation8 + $0x208] sm:$0xf0] }
  0xf3   :  { %v935_v54 = vpop.f32.mrf.mxu0 }
  0xf4   :  { %v949_v17 = vpop.f32.mrf.mxu1  ;;  %v936_v22 = vadd.f32 %v935_v54, %v218_v13  ;;  %v3038_v54 = vld [vmem:[#allocation8 + $0x2d4] sm:$0xf] }
  0xf5   :  { %1865 = vmatpush.bf16.msra.mxu1 %v2689_v15  ;;  %1853 = vmatpush.bf16.msra.mxu0 %v2609_v1  ;;  %v2750_v15 = vld [vmem:[#allocation8 + $0x2d8] sm:$0xf0]  ;;  %v2710_v1 = vld [vmem:[#allocation8 + $0x288] sm:$0xf0] }
  0xf6   :  { %v950_v30 = vadd.f32 %v949_v17, %v936_v22  ;;  %v2649_v17 = vor.u32 %v3012_v4, %v2646_v5  ;;  %v2753_v22 = vor.u32 %v3038_v54, %v2750_v15  ;;  %v3046_v4 = vld [vmem:[#allocation8 + $0x314] sm:$0xf]  ;;  %v2782_v5 = vld [vmem:[#allocation8 + $0x318] sm:$0xf0] }
  0xf8   :  { %v1014_v45 = vmax.f32 %v950_v30, 0.0 }
  0xf9   :  { %1866 = vmatpush.bf16.msra.mxu1 %v2681_v24  ;;  %v2822_v24 = vld [vmem:[#allocation8 + $0x368] sm:$0xf0]  ;;  %1854 = vmatpush.bf16.msra.mxu0 %v2601_v14 }
  0xfa   :  { %v2825_v30 = vor.u32 %v3056_v23, %v2822_v24 }
  0xfb   :  { %v963_v31 = vpop.f32.mrf.mxu2  ;;  %v937_v35 = vpop.f32.mrf.mxu0 }
  0xfc   :  { %v977_v34 = vpop.f32.mrf.mxu3  ;;  %v938_v37 = vadd.f32 %v937_v35, %v218_v13  ;;  %v951_v38 = vpop.f32.mrf.mxu1  ;;  %v964_v42 = vadd.f32 %v963_v31, %v219_v27  ;;  %1815 = vmatmul.bf16.vlgmr.msrb.gmra.mxu1 %v3274_v57  ;;  %v2830_v13 = vld [vmem:[#allocation8 + $0x378] sm:$0xf0]  ;;  %v2585_v35 = vor.u32 %v2996_v28, %v2582_v29 }
  0xfd   :  { %1867 = vmatpush.bf16.msra.mxu1 %v2673_v36  ;;  %v2833_v18 = vor.u32 %v3058_v12, %v2830_v13  ;;  %1855 = vmatpush.bf16.msra.mxu0 %v2593_v25  ;;  %v3034_v36 = vld [vmem:[#allocation8 + $0x2b4] sm:$0xf]  ;;  %v2774_v12 = vld [vmem:[#allocation8 + $0x308] sm:$0xf0] }
  0xfe   :  { %v952_v46 = vadd.f32 %v951_v38, %v938_v37  ;;  %v978_v55 = vadd.f32 %v977_v34, %v964_v42  ;;  %v2814_v34 = vld [vmem:[#allocation8 + $0x358] sm:$0xf0]  ;;  %v3052_v42 = vld [vmem:[#allocation8 + $0x344] sm:$0xf] }
  0xff   :  { %v2734_v37 = vld [vmem:[#allocation8 + $0x2b8] sm:$0xf0]  ;;  %v2817_v38 = vor.u32 %v3054_v33, %v2814_v34  ;;  %v2809_v48 = vor.u32 %v3052_v42, %v2806_v43 }
 0x100   :  { %v1021_v51 = vmax.f32 %v952_v46, 0.0  ;;  %v1015_v9 = vmax.f32 %v978_v55, 0.0  ;;  %v2737_v40 = vor.u32 %v3034_v36, %v2734_v37  ;;  %v3032_v46 = vld [vmem:[#allocation8 + $0x2a4] sm:$0xf]  ;;  %v2718_v55 = vld [vmem:[#allocation8 + $0x298] sm:$0xf0] }
 0x101   :  { %1868 = vmatpush.bf16.msra.mxu1 %v2665_v50  ;;  %1856 = vmatpush.bf16.msra.mxu0 %v2585_v35  ;;  %v2729_v49 = vor.u32 %v3032_v46, %v2726_v47  ;;  %v3050_v50 = vld [vmem:[#allocation8 + $0x334] sm:$0xf]  ;;  %v2721_v59 = vor.u32 %v3030_v53, %v2718_v55 }
 0x102   :  { %v1028_v60 = vpack.c.bf16 %v1021_v51, %v1014_v45  ;;  %v2798_v51 = vld [vmem:[#allocation8 + $0x338] sm:$0xf0] }
 0x103   :  { %v965_v61 = vpop.f32.mrf.mxu2 }
 0x104   :  { %v966_v2 = vadd.f32 %v965_v61, %v219_v27  ;;  %v979_v57 = vpop.f32.mrf.mxu3  ;;  %1773 = vmatmul.bf16.vlgmr.msra.gmra.mxu2 %v1028_v60  ;;  %v2742_v27 = vld [vmem:[#allocation8 + $0x2c8] sm:$0xf0] }
 0x105   :  { %1877 = vmatpush.bf16.msra.mxu2 %v2769_v56  ;;  %1869 = vmatpush.bf16.msra.mxu1 %v2657_v3  ;;  %v2745_v31 = vor.u32 %v3036_v26, %v2742_v27  ;;  %v2801_v56 = vor.u32 %v3050_v50, %v2798_v51  ;;  %v2713_v3 = vor.u32 %v3028_v63, %v2710_v1 }
 0x106   :  { %v980_v10 = vadd.f32 %v979_v57, %v966_v2 }
 0x108   :  { %v1022_v16 = vmax.f32 %v980_v10, 0.0  ;;  %v2785_v10 = vor.u32 %v3046_v4, %v2782_v5 }
 0x109   :  { %1878 = vmatpush.bf16.msra.mxu2 %v2761_v11  ;;  %1870 = vmatpush.bf16.msra.mxu1 %v2649_v17  ;;  %v3044_v11 = vld [vmem:[#allocation8 + $0x304] sm:$0xf]  ;;  %v1143_v17 = vld [vmem:[%s3309_s4] sm:$0x3]  ;;  %s3207_s4 = smov [#allocation10]  }
 0x10a   :  { %v3291_v21 = vpack.c.bf16 %v1022_v16, %v1015_v9  ;;  %v1145_v19 = vperm.slane %v1143_v17, 0  ;;  %s1913_s15 = sshll.u32 %s3207_s4, 4  ;;  %s1914_s15 = int_to_ptr.vmem [resolvable:$true] %s1913_s15 }
 0x10c   :  { %1787 = vmatmul.bf16.vlgmr.msra.gmra.mxu3 %v3291_v21  ;;  %1871 = vmatmul.bf16.vlgmr.msra.gmra.mxu1 %v1028_v60  ;;  %v2790_v60 = vld [vmem:[#allocation8 + $0x328] sm:$0xf0] }
 0x10d   :  { %1891 = vmatpush.bf16.msra.mxu3 %v2833_v18  ;;  %1879 = vmatpush.bf16.msra.mxu2 %v2753_v22  ;;  %v2793_v57 = vor.u32 %v3048_v7, %v2790_v60 }
 0x111   :  { %1892 = vmatpush.bf16.msra.mxu3 %v2825_v30  ;;  %1880 = vmatpush.bf16.msra.mxu2 %v2745_v31 }
 0x113   :  { %v991_v39 = vpop.f32.mrf.mxu0 }
 0x114   :  { %v1005_v45 = vpop.f32.mrf.mxu1  ;;  %1829 = vmatmul.bf16.vlgmr.msrb.gmra.mxu2 %v3277_v32  ;;  %v992_v52 = vadd.f32 %v991_v39, %v220_v44 }
 0x115   :  { %1893 = vmatpush.bf16.msra.mxu3 %v2817_v38  ;;  %1881 = vmatpush.bf16.msra.mxu2 %v2737_v40 }
 0x116   :  { %v1006_v61 = vadd.f32 %v1005_v45, %v992_v52 }
 0x118   :  { %v1016_v6 = vmax.f32 %v1006_v61, 0.0 }
 0x119   :  { %1894 = vmatpush.bf16.msra.mxu3 %v2809_v48  ;;  %1882 = vmatpush.bf16.msra.mxu2 %v2729_v49 }
 0x11b   :  { %v993_v58 = vpop.f32.mrf.mxu0 }
 0x11c   :  { %v994_v62 = vadd.f32 %v993_v58, %v220_v44  ;;  %v1007_v32 = vpop.f32.mrf.mxu1  ;;  %1843 = vmatmul.bf16.vlgmr.msrb.gmra.mxu3 %v3282_v41  ;;  %v2777_v41 = vor.u32 %v3044_v11, %v2774_v12  ;;  %v1146_v44 = vperm.slane %v1143_v17, 1 }
 0x11d   :  { %1895 = vmatpush.bf16.msra.mxu3 %v2801_v56  ;;  %1883 = vmatpush.bf16.msra.mxu2 %v2721_v59 }
 0x11e   :  { %v1008_v2 = vadd.f32 %v1007_v32, %v994_v62 }
 0x120   :  { %v1023_v8 = vmax.f32 %v1008_v2, 0.0 }
 0x121   :  { %1896 = vmatpush.bf16.msra.mxu3 %v2793_v57  ;;  %1884 = vmatpush.bf16.msra.mxu2 %v2713_v3 }
 0x122   :  { %v1030_v9 = vpack.c.bf16 %v1023_v8, %v1016_v6 }
 0x124   :  { %1801 = vmatmul.bf16.vlgmr.msrb.gmra.mxu0 %v1030_v9  ;;  %1885 = vmatmul.bf16.vlgmr.msra.gmra.mxu2 %v3291_v21 }
 0x125   :  { %1897 = vmatpush.bf16.msra.mxu3 %v2785_v10 }
 0x129   :  { %1898 = vmatpush.bf16.msra.mxu3 %v2777_v41 }
 0x12c   :  { %1899 = vmatmul.bf16.vlgmr.msra.gmra.mxu3 %v1030_v9 }
 0x134   :  { %1857 = vmatmul.bf16.vlgmr.msra.gmra.mxu0 %v3285_v0 }
 0x147   :  { %v1718_v13 = vpop.f32.mrf.mxu2 }
 0x148   :  { %v1719_v23 = vadd.f32 %v1718_v13, %v1145_v19 }
 0x14f   :  { %v1732_v14 = vpop.f32.mrf.mxu3  ;;  %v1720_v54 = vpop.f32.mrf.mxu2 }
 0x150   :  { %v1733_v25 = vadd.f32 %v1732_v14, %v1719_v23  ;;  %v1721_v28 = vadd.f32 %v1720_v54, %v1145_v19 }
 0x157   :  { %v1734_v15 = vpop.f32.mrf.mxu3 }
 0x158   :  { %v1735_v34 = vadd.f32 %v1734_v15, %v1721_v28 }
 0x161   :  { %v1746_v20 = vpop.f32.mrf.mxu0 }
 0x162   :  { %v1747_v0 = vadd.f32 %v1746_v20, %v1733_v25 }
 0x169   :  { %v1760_v16 = vpop.f32.mrf.mxu1  ;;  %v1748_v27 = vpop.f32.mrf.mxu0 }
 0x16a   :  { %v1761_v29 = vadd.f32 %v1760_v16, %v1747_v0  ;;  %v1749_v38 = vadd.f32 %v1748_v27, %v1735_v34 }
 0x171   :  { %v1762_v21 = vpop.f32.mrf.mxu1 }
 0x172   :  { %v1763_v40 = vadd.f32 %v1762_v21, %v1749_v38 }
 0x179   :  { %v1816_v30 = vpop.f32.mrf.mxu1 }
 0x17a   :  { %v1817_v50 = vadd.f32 %v1816_v30, %v1146_v44 }
 0x181   :  { %v1818_v43 = vpop.f32.mrf.mxu1 }
 0x182   :  { %v1819_v59 = vadd.f32 %v1818_v43, %v1146_v44 }
 0x187   :  { %v1774_v18 = vpop.f32.mrf.mxu2 }
 0x188   :  { %v1775_v31 = vadd.f32 %v1774_v18, %v1761_v29 }
 0x189   :  { %v1872_v53 = vpop.f32.mrf.mxu1 }
 0x18f   :  { %v1788_v22 = vpop.f32.mrf.mxu3  ;;  %v1776_v24 = vpop.f32.mrf.mxu2 }
 0x190   :  { %v1789_v35 = vadd.f32 %v1788_v22, %v1775_v31  ;;  %v1777_v42 = vadd.f32 %v1776_v24, %v1763_v40 }
 0x191   :  { %v1874_v57 = vpop.f32.mrf.mxu1 }
 0x197   :  { %v1790_v26 = vpop.f32.mrf.mxu3  ;;  %v1830_v33 = vpop.f32.mrf.mxu2 }
 0x198   :  { %v1791_v45 = vadd.f32 %v1790_v26, %v1777_v42  ;;  %v1831_v51 = vadd.f32 %v1830_v33, %v1817_v50 }
 0x19f   :  { %v1844_v36 = vpop.f32.mrf.mxu3  ;;  %v1832_v46 = vpop.f32.mrf.mxu2 }
 0x1a0   :  { %v1845_v52 = vadd.f32 %v1844_v36, %v1831_v51  ;;  %v1833_v61 = vadd.f32 %v1832_v46, %v1819_v59 }
 0x1a1   :  { %v1802_v37 = vpop.f32.mrf.mxu0 }
 0x1a2   :  { %v1803_v39 = vadd.f32 %v1802_v37, %v1789_v35 }
 0x1a4   :  { %1905 = vst [vmem:[#allocation10] sm:$0xff] %v1803_v39 }
 0x1a7   :  { %v1846_v49 = vpop.f32.mrf.mxu3  ;;  %v1886_v58 = vpop.f32.mrf.mxu2 }
 0x1a8   :  { %v1847_v63 = vadd.f32 %v1846_v49, %v1833_v61 }
 0x1a9   :  { %v1804_v47 = vpop.f32.mrf.mxu0 }
 0x1aa   :  { %v1805_v48 = vadd.f32 %v1804_v47, %v1791_v45 }
 0x1ac   :  { %1907 = vst [vmem:[#allocation10 + $0x10] sm:$0xff] %v1805_v48 }
 0x1af   :  { %v1900_v60 = vpop.f32.mrf.mxu3  ;;  %v1888_v4 = vpop.f32.mrf.mxu2 }
 0x1b1   :  { %v1858_v55 = vpop.f32.mrf.mxu0 }
 0x1b2   :  { %v1859_v56 = vadd.f32 %v1858_v55, %v1845_v52 }
 0x1b4   :  { %v1873_v7 = vadd.f32 %v1872_v53, %v1859_v56 }
 0x1b6   :  { %v1887_v62 = vadd.f32 %v1886_v58, %v1873_v7 }
 0x1b7   :  { %v1902_v6 = vpop.f32.mrf.mxu3 }
 0x1b8   :  { %v1901_v1 = vadd.f32 %v1900_v60, %v1887_v62 }
 0x1b9   :  { %v1860_v32 = vpop.f32.mrf.mxu0 }
 0x1ba   :  { %1906 = vst [vmem:[#allocation10 + $0x8] sm:$0xff] %v1901_v1  ;;  %v1861_v2 = vadd.f32 %v1860_v32, %v1847_v63 }
 0x1bc   :  { %v1875_v3 = vadd.f32 %v1874_v57, %v1861_v2 }
 0x1be   :  { %v1889_v5 = vadd.f32 %v1888_v4, %v1875_v3 }
 0x1c0   :  { %v1903_v8 = vadd.f32 %v1902_v6, %v1889_v5 }
 0x1c2   :  { %1908 = vst [vmem:[#allocation10 + $0x18] sm:$0xff] %v1903_v8 }
 0x1c3   :  { %1921 = dma.vmem_to_hbm [thread:$0]  %s1914_s15, 512, %s1916_s18, [#allocation4], %s3208_s19, %s3208_s19, %s3209_s20  }
 0x1c4   :  { %3197 = dma.done.wait [#allocation4], 512  }
 0x1c5   :  { %3198 = vsyncadd [#allocation4], 4294966784 }
 0x1c6   :  { %1926 = vsyncpa [#allocation3], 1 }
 0x1c7   :  { %1927 = vsyncpa [#allocation6], 1 }
 0x1c8   :  { %1928 = vsyncpa [#allocation9], 1 }
 0x1c9   :  { %1929 = vsyncpa [#allocation4], 1 }

</bundles_post_ra>
